<compile_context>
chip_gen: v6e
topology: v6e:2x2x1
jax: 0.10.0
libtpu: 0.0.40
codegen_flags: <defaults>
</compile_context>

<pallas_src>
import functools

import jax
import jax.numpy as jnp
from jax.experimental import pallas as pl
from jax.experimental.pallas import tpu as pltpu

LANE = 128
BF16_SUBLANE = 16  # bf16 packs 2 rows per sublane -> align batch tiles to 16


def _round_up(n, m):
    return (n + m - 1) // m * m


def _pad2(a, rows, cols):
    return jnp.pad(a, ((0, rows - a.shape[0]), (0, cols - a.shape[1])))


# ----------------------------------------------------------------------------
# Fused forward kernel (runs once per batch tile).
# refs = [x, (enc_w, enc_b)*, ml_w, ml_b, (dec_w, dec_b)*, eps, dec_out, mulv_out]
# ----------------------------------------------------------------------------
def _vae_kernel(n_enc, n_dec, l_pad, *refs):
    idx = 0
    x_ref = refs[idx]; idx += 1
    enc = []
    for _ in range(n_enc):
        enc.append((refs[idx], refs[idx + 1])); idx += 2
    ml_w_ref, ml_b_ref = refs[idx], refs[idx + 1]; idx += 2
    dec = []
    for _ in range(n_dec + 1):
        dec.append((refs[idx], refs[idx + 1])); idx += 2
    eps_ref = refs[idx]; idx += 1
    dec_out_ref = refs[idx]; idx += 1
    mulv_out_ref = refs[idx]

    # ---- encoder: (Linear -> ReLU)*  (bf16 MXU inputs, f32 accumulation) ----
    h = x_ref[...]                                            # bf16 (tb, d_pad)
    for w_ref, b_ref in enc:
        a = jnp.dot(h, w_ref[...], preferred_element_type=jnp.float32) + b_ref[...]
        h = jnp.maximum(a, 0.0).astype(jnp.bfloat16)

    # ---- fused mu|logvar head: one MXU push, split at a 128-lane boundary ----
    ml = jnp.dot(h, ml_w_ref[...], preferred_element_type=jnp.float32) + ml_b_ref[...]
    mu = ml[:, :l_pad]
    logvar = ml[:, l_pad:]

    # ---- reparameterize: z = mu + eps * exp(0.5 * logvar)  (f32, exp -> EUP) ----
    # TODO(synk): generate eps in-kernel via pltpu.prng_seed / prng_random_bits
    # to drop the eps HBM stream entirely; kept external so the run matches the
    # deterministic reference.
    z = mu + eps_ref[...].astype(jnp.float32) * jnp.exp(0.5 * logvar)

    # ---- decoder: (Linear -> ReLU)* then final Linear (no ReLU) ----
    h = z.astype(jnp.bfloat16)
    a = None
    for i, (w_ref, b_ref) in enumerate(dec):
        a = jnp.dot(h, w_ref[...], preferred_element_type=jnp.float32) + b_ref[...]
        if i < n_dec:
            h = jnp.maximum(a, 0.0).astype(jnp.bfloat16)

    # ---- writebacks: bf16 decoded slab + f32 [mu | logvar] slab (lane-dense) ----
    dec_out_ref[...] = a.astype(dec_out_ref.dtype)
    mulv_out_ref[:, :l_pad] = mu
    mulv_out_ref[:, l_pad:] = logvar


# ----------------------------------------------------------------------------
# Wrapper helpers: generation detection / batch-tile selection.
# ----------------------------------------------------------------------------
def _tpu_kind():
    try:
        return jax.devices()[0].device_kind.lower()
    except Exception:
        return ""


def _pick_tb(batch, tb_cap):
    """Largest multiple of 16 <= tb_cap that keeps dead (padded) rows low."""
    if batch <= tb_cap:
        return max(BF16_SUBLANE, _round_up(batch, BF16_SUBLANE))
    best_tb = tb_cap
    best_waste = _round_up(batch, tb_cap) - batch
    tb = tb_cap
    while tb >= 64:
        waste = _round_up(batch, tb) - batch
        if waste < best_waste:
            best_tb, best_waste = tb, waste
        if waste * 10 <= batch:          # <=10% padding: keep the big tile
            return tb
        tb -= BF16_SUBLANE
    return best_tb


# ----------------------------------------------------------------------------
# Wrapper: padding / bf16 packing / grid setup / output un-slicing.
# ----------------------------------------------------------------------------
def beta_vae_forward(x, params, eps, *, batch_tile=None):
    """params: dict with 'enc' [(w,b),...], 'mu' (w,b), 'logvar' (w,b),
    'dec' [(w,b),...] (last decoder pair has no ReLU). All f32, unpadded."""
    batch, input_dim = x.shape
    latent_dim = params["mu"][0].shape[1]
    n_enc = len(params["enc"])
    n_dec = len(params["dec"]) - 1

    d_pad = _round_up(input_dim, LANE)
    l_pad = _round_up(latent_dim, LANE)

    kind = _tpu_kind()
    is_v5e = ("v5 lite" in kind) or ("v5e" in kind) or ("v5lite" in kind)
    is_v7 = "v7" in kind

    # Generation-aware batch tile: 128 maps natively to v5e's 4x128^2 MXU;
    # 256 fills the 2x256^2 MXU on v6e/v7x and halves per-grid-step overhead.
    if batch_tile is None:
        batch_tile = 128 if is_v5e else 256
    batch_tile = _round_up(batch_tile, BF16_SUBLANE)

    tb = _pick_tb(batch, batch_tile)
    batch_pad = _round_up(batch, tb)

    # v7x megacore: ensure >=2 grid steps so both TensorCores get batch tiles.
    if is_v7 and batch_pad // tb < 2 and tb >= 2 * BF16_SUBLANE:
        tb = _round_up(pl.cdiv(tb, 2), BF16_SUBLANE)
        batch_pad = _round_up(batch, tb)
    grid = (batch_pad // tb,)

    # ---- pack / pad / cast parameters (one-time layout plumbing) ----
    flat_inputs = [_pad2(x, batch_pad, d_pad).astype(jnp.bfloat16)]

    mm_dims = []
    cur = d_pad
    for w, b in params["enc"]:
        out_p = _round_up(w.shape[1], LANE)
        flat_inputs.append(_pad2(w, cur, out_p).astype(jnp.bfloat16))
        flat_inputs.append(_pad2(b, 1, out_p).astype(jnp.float32))
        mm_dims.append((cur, out_p))
        cur = out_p

    # Fuse mu|logvar into a single (hidden, 2*l_pad) weight + bias.
    w_mu, b_mu = params["mu"]
    w_lv, b_lv = params["logvar"]
    ml_w = jnp.concatenate([_pad2(w_mu, cur, l_pad), _pad2(w_lv, cur, l_pad)], axis=1)
    ml_b = jnp.concatenate([_pad2(b_mu, 1, l_pad), _pad2(b_lv, 1, l_pad)], axis=1)
    flat_inputs.append(ml_w.astype(jnp.bfloat16))
    flat_inputs.append(ml_b.astype(jnp.float32))
    mm_dims.append((cur, 2 * l_pad))

    cur = l_pad
    for w, b in params["dec"]:
        out_p = _round_up(w.shape[1], LANE)
        flat_inputs.append(_pad2(w, cur, out_p).astype(jnp.bfloat16))
        flat_inputs.append(_pad2(b, 1, out_p).astype(jnp.float32))
        mm_dims.append((cur, out_p))
        cur = out_p

    # eps streamed as bf16 (halves its HBM bytes; upcast to f32 in-kernel).
    flat_inputs.append(_pad2(eps, batch_pad, l_pad).astype(jnp.bfloat16))

    # ---- outputs: bf16 decoded slab + f32 [mu|logvar] slab (both lane-dense) ----
    out_shape = (jax.ShapeDtypeStruct((batch_pad, d_pad), jnp.bfloat16),
                 jax.ShapeDtypeStruct((batch_pad, 2 * l_pad), jnp.float32))
    out_specs = (pl.BlockSpec((tb, d_pad), lambda i: (i, 0)),
                 pl.BlockSpec((tb, 2 * l_pad), lambda i: (i, 0)))

    def build_in_specs(single_buffer_weights):
        if single_buffer_weights:
            # Constant index_map -> weights never change; single buffer suffices.
            def resident(shape):
                return pl.BlockSpec(shape, lambda i: (0, 0),
                                    pipeline_mode=pl.Buffered(1))
        else:
            def resident(shape):
                return pl.BlockSpec(shape, lambda i: (0, 0))
        specs = [pl.BlockSpec((tb, d_pad), lambda i: (i, 0))]           # x
        for a in flat_inputs[1:-1]:                                     # weights/biases
            specs.append(resident(a.shape))
        specs.append(pl.BlockSpec((tb, l_pad), lambda i: (i, 0)))       # eps
        return specs

    # ---- cost estimate + generation-aware VMEM budget ----
    flops = 2 * batch_pad * sum(k * n for k, n in mm_dims)
    bytes_accessed = sum(a.size * a.dtype.itemsize for a in flat_inputs)
    bytes_accessed += batch_pad * d_pad * 2 + batch_pad * 2 * l_pad * 4
    cost = pl.CostEstimate(flops=int(flops),
                           transcendentals=int(batch_pad * l_pad),
                           bytes_accessed=int(bytes_accessed))

    weight_bytes = sum(a.size * a.dtype.itemsize for a in flat_inputs[1:-1])
    # per-step streamed tile bytes: x(bf16) + eps(bf16) + dec_out(bf16) + mulv(f32)
    tile_bytes = tb * (d_pad * 2 + l_pad * 2 + d_pad * 2 + 2 * l_pad * 4)
    needed = weight_bytes + 2 * tile_bytes + (4 << 20)   # dbl-buffered tiles + margin
    # v7x: leave headroom under 64 MiB physical; v5e/v6e: exploit 128 MiB.
    vmem_cap = (48 << 20) if is_v7 else (96 << 20)
    # TODO(synk): if single-buffered weights + tiles exceed vmem_cap (very large
    # hidden dims on v7x), tile the big layers with an inner pltpu.emit_pipeline
    # over K/N instead of relying on this clamp.
    vmem_limit = int(min(max(needed, 16 << 20), vmem_cap))

    kernel = functools.partial(_vae_kernel, n_enc, n_dec, l_pad)

    def call(single_buffer_weights):
        fn = pl.pallas_call(
            kernel,
            out_shape=out_shape,
            grid=grid,
            in_specs=build_in_specs(single_buffer_weights),
            out_specs=out_specs,
            compiler_params=pltpu.CompilerParams(
                dimension_semantics=("parallel",),   # batch tiles shard across TCs
                vmem_limit_bytes=vmem_limit),
            cost_estimate=cost,
        )
        outs = fn(*flat_inputs)
        jax.block_until_ready(outs)
        return outs

    try:
        dec_p, mulv_p = call(True)
    except Exception:
        # Fallback for JAX versions without BlockSpec.pipeline_mode support.
        dec_p, mulv_p = call(False)

    decoded = dec_p[:batch, :input_dim].astype(jnp.float32)
    mu = mulv_p[:batch, :latent_dim]
    logvar = mulv_p[:batch, l_pad:l_pad + latent_dim]
    return decoded, mu, logvar


# ----------------------------------------------------------------------------
# Deterministic parameter init (PyTorch nn.Linear-style uniform ±1/sqrt(fan_in))
# ----------------------------------------------------------------------------
def _init_linear(key, fan_in, fan_out):
    kw, kb = jax.random.split(key)
    bound = 1.0 / jnp.sqrt(fan_in)
    w = jax.random.uniform(kw, (fan_in, fan_out), jnp.float32, -bound, bound)
    b = jax.random.uniform(kb, (1, fan_out), jnp.float32, -bound, bound)
    return w, b


def init_beta_vae(key, input_dim, latent_dim, encoder_layers, decoder_layers):
    params = {"enc": [], "dec": []}
    cur = input_dim
    for units in encoder_layers:
        key, sub = jax.random.split(key)
        params["enc"].append(_init_linear(sub, cur, units))
        cur = units
    key, sub = jax.random.split(key)
    params["mu"] = _init_linear(sub, cur, latent_dim)
    key, sub = jax.random.split(key)
    params["logvar"] = _init_linear(sub, cur, latent_dim)
    cur = latent_dim
    for units in decoder_layers:
        key, sub = jax.random.split(key)
        params["dec"].append(_init_linear(sub, cur, units))
        cur = units
    key, sub = jax.random.split(key)
    params["dec"].append(_init_linear(sub, cur, input_dim))
    return params


# ----------------------------------------------------------------------------
# Pure-JAX reference mirroring the bf16-MXU / f32-accumulate numerics.
# ----------------------------------------------------------------------------
def beta_vae_ref(x, params, eps):
    def mm(h, w, b):
        return jnp.dot(h.astype(jnp.bfloat16), w.astype(jnp.bfloat16),
                       preferred_element_type=jnp.float32) + b

    h = x
    for w, b in params["enc"]:
        h = jnp.maximum(mm(h, w, b), 0.0)
    mu = mm(h, params["mu"][0], params["mu"][1])
    logvar = mm(h, params["logvar"][0], params["logvar"][1])
    eps_bf = eps.astype(jnp.bfloat16).astype(jnp.float32)   # kernel streams eps as bf16
    z = mu + eps_bf * jnp.exp(0.5 * logvar)
    h = z
    n_dec = len(params["dec"]) - 1
    for i, (w, b) in enumerate(params["dec"]):
        h = mm(h, w, b)
        if i < n_dec:
            h = jnp.maximum(h, 0.0)
    return h, mu, logvar


if __name__ == "__main__":
    # Small shapes consistent with the module's forward (flat-feature MLP VAE).
    batch = 8
    input_dim = 32
    latent_dim = 8
    encoder_layers = [64, 32]
    decoder_layers = [32, 64]

    key = jax.random.PRNGKey(0)
    key, pkey, xkey, ekey = jax.random.split(key, 4)

    params = init_beta_vae(pkey, input_dim, latent_dim,
                           encoder_layers, decoder_layers)
    x = jax.random.normal(xkey, (batch, input_dim), jnp.float32)
    # eps for reparameterize is drawn outside the kernel so the run stays
    # deterministic and testable against the reference.
    eps = jax.random.normal(ekey, (batch, latent_dim), jnp.float32)

    decoded, mu, logvar = beta_vae_forward(x, params, eps)
    jax.block_until_ready((decoded, mu, logvar))

    d_ref, mu_ref, lv_ref = beta_vae_ref(x, params, eps)
    # mu / logvar stay in f32 (KL precision) -> tight tolerance.
    assert jnp.allclose(mu, mu_ref, atol=1e-3, rtol=1e-3)
    assert jnp.allclose(logvar, lv_ref, atol=1e-3, rtol=1e-3)
    # decoded is written back in bf16 (writeback-bandwidth optimization);
    # compare against the bf16-rounded reference.
    d_ref_bf = d_ref.astype(jnp.bfloat16).astype(jnp.float32)
    assert jnp.allclose(decoded, d_ref_bf, atol=2e-2, rtol=2e-2)

    print("KERNEL_OK")
</pallas_src>

<mosaic_0001>
module attributes {stable_mosaic.version = 11 : i64} {
  func.func @_vae_kernel(%arg0: i32, %arg1: memref<16x128xbf16, #tpu.memory_space<vmem>>, %arg2: memref<128x128xbf16, #tpu.memory_space<vmem>>, %arg3: memref<1x128xf32, #tpu.memory_space<vmem>>, %arg4: memref<128x128xbf16, #tpu.memory_space<vmem>>, %arg5: memref<1x128xf32, #tpu.memory_space<vmem>>, %arg6: memref<128x256xbf16, #tpu.memory_space<vmem>>, %arg7: memref<1x256xf32, #tpu.memory_space<vmem>>, %arg8: memref<128x128xbf16, #tpu.memory_space<vmem>>, %arg9: memref<1x128xf32, #tpu.memory_space<vmem>>, %arg10: memref<128x128xbf16, #tpu.memory_space<vmem>>, %arg11: memref<1x128xf32, #tpu.memory_space<vmem>>, %arg12: memref<128x128xbf16, #tpu.memory_space<vmem>>, %arg13: memref<1x128xf32, #tpu.memory_space<vmem>>, %arg14: memref<16x128xbf16, #tpu.memory_space<vmem>>, %arg15: memref<16x128xbf16, #tpu.memory_space<vmem>>, %arg16: memref<16x256xf32, #tpu.memory_space<vmem>>) attributes {dimension_semantics = [#tpu.dimension_semantics<parallel>], iteration_bounds = array<i64: 1>, scalar_prefetch = 0 : i64, scratch_operands = 0 : i64, tpu.core_type = #tpu.core_type<tc>, window_params = [{transform_indices = @transform_0, window_bounds = array<i64: 16, 128>}, {pipeline_mode = #tpu.pipeline_mode<synchronous>, transform_indices = @transform_1, window_bounds = array<i64: 128, 128>}, {pipeline_mode = #tpu.pipeline_mode<synchronous>, transform_indices = @transform_2, window_bounds = array<i64: 1, 128>}, {pipeline_mode = #tpu.pipeline_mode<synchronous>, transform_indices = @transform_3, window_bounds = array<i64: 128, 128>}, {pipeline_mode = #tpu.pipeline_mode<synchronous>, transform_indices = @transform_4, window_bounds = array<i64: 1, 128>}, {pipeline_mode = #tpu.pipeline_mode<synchronous>, transform_indices = @transform_5, window_bounds = array<i64: 128, 256>}, {pipeline_mode = #tpu.pipeline_mode<synchronous>, transform_indices = @transform_6, window_bounds = array<i64: 1, 256>}, {pipeline_mode = #tpu.pipeline_mode<synchronous>, transform_indices = @transform_7, window_bounds = array<i64: 128, 128>}, {pipeline_mode = #tpu.pipeline_mode<synchronous>, transform_indices = @transform_8, window_bounds = array<i64: 1, 128>}, {pipeline_mode = #tpu.pipeline_mode<synchronous>, transform_indices = @transform_9, window_bounds = array<i64: 128, 128>}, {pipeline_mode = #tpu.pipeline_mode<synchronous>, transform_indices = @transform_10, window_bounds = array<i64: 1, 128>}, {pipeline_mode = #tpu.pipeline_mode<synchronous>, transform_indices = @transform_11, window_bounds = array<i64: 128, 128>}, {pipeline_mode = #tpu.pipeline_mode<synchronous>, transform_indices = @transform_12, window_bounds = array<i64: 1, 128>}, {transform_indices = @transform_13, window_bounds = array<i64: 16, 128>}, {transform_indices = @transform_14, window_bounds = array<i64: 16, 128>}, {transform_indices = @transform_15, window_bounds = array<i64: 16, 256>}]} {
    %c0 = arith.constant 0 : index
    %c0_0 = arith.constant 0 : index
    %0 = vector.load %arg1[%c0, %c0_0] : memref<16x128xbf16, #tpu.memory_space<vmem>>, vector<16x128xbf16>
    %c0_1 = arith.constant 0 : index
    %c0_2 = arith.constant 0 : index
    %1 = vector.load %arg2[%c0_1, %c0_2] : memref<128x128xbf16, #tpu.memory_space<vmem>>, vector<128x128xbf16>
    %cst = arith.constant dense<0.000000e+00> : vector<16x128xf32>
    %2 = tpu.matmul %0, %1, %cst {dimension_numbers = #tpu.dot_dimension_numbers<[1], [0], [0], [1], [0, 0, 1, 1], [], []>} : vector<16x128xbf16>, vector<128x128xbf16>, vector<16x128xf32> -> vector<16x128xf32>
    %c0_3 = arith.constant 0 : index
    %c0_4 = arith.constant 0 : index
    %3 = vector.load %arg3[%c0_3, %c0_4] : memref<1x128xf32, #tpu.memory_space<vmem>>, vector<1x128xf32>
    %4 = vector.broadcast %3 : vector<1x128xf32> to vector<16x128xf32>
    %5 = arith.addf %2, %4 : vector<16x128xf32>
    %cst_5 = arith.constant 0.000000e+00 : f32
    %6 = vector.broadcast %cst_5 : f32 to vector<16x128xf32>
    %7 = arith.maximumf %5, %6 : vector<16x128xf32>
    %8 = arith.truncf %7 : vector<16x128xf32> to vector<16x128xbf16>
    %c0_6 = arith.constant 0 : index
    %c0_7 = arith.constant 0 : index
    %9 = vector.load %arg4[%c0_6, %c0_7] : memref<128x128xbf16, #tpu.memory_space<vmem>>, vector<128x128xbf16>
    %cst_8 = arith.constant dense<0.000000e+00> : vector<16x128xf32>
    %10 = tpu.matmul %8, %9, %cst_8 {dimension_numbers = #tpu.dot_dimension_numbers<[1], [0], [0], [1], [0, 0, 1, 1], [], []>} : vector<16x128xbf16>, vector<128x128xbf16>, vector<16x128xf32> -> vector<16x128xf32>
    %c0_9 = arith.constant 0 : index
    %c0_10 = arith.constant 0 : index
    %11 = vector.load %arg5[%c0_9, %c0_10] : memref<1x128xf32, #tpu.memory_space<vmem>>, vector<1x128xf32>
    %12 = vector.broadcast %11 : vector<1x128xf32> to vector<16x128xf32>
    %13 = arith.addf %10, %12 : vector<16x128xf32>
    %cst_11 = arith.constant 0.000000e+00 : f32
    %14 = vector.broadcast %cst_11 : f32 to vector<16x128xf32>
    %15 = arith.maximumf %13, %14 : vector<16x128xf32>
    %16 = arith.truncf %15 : vector<16x128xf32> to vector<16x128xbf16>
    %c0_12 = arith.constant 0 : index
    %c0_13 = arith.constant 0 : index
    %17 = vector.load %arg6[%c0_12, %c0_13] : memref<128x256xbf16, #tpu.memory_space<vmem>>, vector<128x256xbf16>
    %cst_14 = arith.constant dense<0.000000e+00> : vector<16x256xf32>
    %18 = tpu.matmul %16, %17, %cst_14 {dimension_numbers = #tpu.dot_dimension_numbers<[1], [0], [0], [1], [0, 0, 1, 1], [], []>} : vector<16x128xbf16>, vector<128x256xbf16>, vector<16x256xf32> -> vector<16x256xf32>
    %c0_15 = arith.constant 0 : index
    %c0_16 = arith.constant 0 : index
    %19 = vector.load %arg7[%c0_15, %c0_16] : memref<1x256xf32, #tpu.memory_space<vmem>>, vector<1x256xf32>
    %20 = vector.broadcast %19 : vector<1x256xf32> to vector<16x256xf32>
    %21 = arith.addf %18, %20 : vector<16x256xf32>
    %22 = vector.extract_strided_slice %21 {offsets = [0, 0], sizes = [16, 128], strides = [1, 1]} : vector<16x256xf32> to vector<16x128xf32>
    %23 = vector.extract_strided_slice %21 {offsets = [0, 128], sizes = [16, 128], strides = [1, 1]} : vector<16x256xf32> to vector<16x128xf32>
    %c0_17 = arith.constant 0 : index
    %c0_18 = arith.constant 0 : index
    %24 = vector.load %arg14[%c0_17, %c0_18] : memref<16x128xbf16, #tpu.memory_space<vmem>>, vector<16x128xbf16>
    %25 = arith.extf %24 : vector<16x128xbf16> to vector<16x128xf32>
    %cst_19 = arith.constant 5.000000e-01 : f32
    %26 = vector.broadcast %cst_19 : f32 to vector<16x128xf32>
    %27 = arith.mulf %26, %23 : vector<16x128xf32>
    %28 = math.exp %27 : vector<16x128xf32>
    %29 = arith.mulf %25, %28 : vector<16x128xf32>
    %30 = arith.addf %22, %29 : vector<16x128xf32>
    %31 = arith.truncf %30 : vector<16x128xf32> to vector<16x128xbf16>
    %c0_20 = arith.constant 0 : index
    %c0_21 = arith.constant 0 : index
    %32 = vector.load %arg8[%c0_20, %c0_21] : memref<128x128xbf16, #tpu.memory_space<vmem>>, vector<128x128xbf16>
    %cst_22 = arith.constant dense<0.000000e+00> : vector<16x128xf32>
    %33 = tpu.matmul %31, %32, %cst_22 {dimension_numbers = #tpu.dot_dimension_numbers<[1], [0], [0], [1], [0, 0, 1, 1], [], []>} : vector<16x128xbf16>, vector<128x128xbf16>, vector<16x128xf32> -> vector<16x128xf32>
    %c0_23 = arith.constant 0 : index
    %c0_24 = arith.constant 0 : index
    %34 = vector.load %arg9[%c0_23, %c0_24] : memref<1x128xf32, #tpu.memory_space<vmem>>, vector<1x128xf32>
    %35 = vector.broadcast %34 : vector<1x128xf32> to vector<16x128xf32>
    %36 = arith.addf %33, %35 : vector<16x128xf32>
    %cst_25 = arith.constant 0.000000e+00 : f32
    %37 = vector.broadcast %cst_25 : f32 to vector<16x128xf32>
    %38 = arith.maximumf %36, %37 : vector<16x128xf32>
    %39 = arith.truncf %38 : vector<16x128xf32> to vector<16x128xbf16>
    %c0_26 = arith.constant 0 : index
    %c0_27 = arith.constant 0 : index
    %40 = vector.load %arg10[%c0_26, %c0_27] : memref<128x128xbf16, #tpu.memory_space<vmem>>, vector<128x128xbf16>
    %cst_28 = arith.constant dense<0.000000e+00> : vector<16x128xf32>
    %41 = tpu.matmul %39, %40, %cst_28 {dimension_numbers = #tpu.dot_dimension_numbers<[1], [0], [0], [1], [0, 0, 1, 1], [], []>} : vector<16x128xbf16>, vector<128x128xbf16>, vector<16x128xf32> -> vector<16x128xf32>
    %c0_29 = arith.constant 0 : index
    %c0_30 = arith.constant 0 : index
    %42 = vector.load %arg11[%c0_29, %c0_30] : memref<1x128xf32, #tpu.memory_space<vmem>>, vector<1x128xf32>
    %43 = vector.broadcast %42 : vector<1x128xf32> to vector<16x128xf32>
    %44 = arith.addf %41, %43 : vector<16x128xf32>
    %cst_31 = arith.constant 0.000000e+00 : f32
    %45 = vector.broadcast %cst_31 : f32 to vector<16x128xf32>
    %46 = arith.maximumf %44, %45 : vector<16x128xf32>
    %47 = arith.truncf %46 : vector<16x128xf32> to vector<16x128xbf16>
    %c0_32 = arith.constant 0 : index
    %c0_33 = arith.constant 0 : index
    %48 = vector.load %arg12[%c0_32, %c0_33] : memref<128x128xbf16, #tpu.memory_space<vmem>>, vector<128x128xbf16>
    %cst_34 = arith.constant dense<0.000000e+00> : vector<16x128xf32>
    %49 = tpu.matmul %47, %48, %cst_34 {dimension_numbers = #tpu.dot_dimension_numbers<[1], [0], [0], [1], [0, 0, 1, 1], [], []>} : vector<16x128xbf16>, vector<128x128xbf16>, vector<16x128xf32> -> vector<16x128xf32>
    %c0_35 = arith.constant 0 : index
    %c0_36 = arith.constant 0 : index
    %50 = vector.load %arg13[%c0_35, %c0_36] : memref<1x128xf32, #tpu.memory_space<vmem>>, vector<1x128xf32>
    %51 = vector.broadcast %50 : vector<1x128xf32> to vector<16x128xf32>
    %52 = arith.addf %49, %51 : vector<16x128xf32>
    %53 = arith.truncf %52 : vector<16x128xf32> to vector<16x128xbf16>
    %c0_37 = arith.constant 0 : index
    %c0_38 = arith.constant 0 : index
    %54 = vector.load %arg15[%c0_37, %c0_38] : memref<16x128xbf16, #tpu.memory_space<vmem>>, vector<16x128xbf16>
    tpu.vector_store %arg15[%c0_37, %c0_38], %53 {strides = array<i32>} : memref<16x128xbf16, #tpu.memory_space<vmem>>, vector<16x128xbf16>,
    %c0_39 = arith.constant 0 : index
    %c0_40 = arith.constant 0 : index
    %55 = vector.load %arg16[%c0_39, %c0_40] : memref<16x256xf32, #tpu.memory_space<vmem>>, vector<16x128xf32>
    tpu.vector_store %arg16[%c0_39, %c0_40], %22 {strides = array<i32>} : memref<16x256xf32, #tpu.memory_space<vmem>>, vector<16x128xf32>,
    %c0_41 = arith.constant 0 : index
    %c128 = arith.constant 128 : index
    %56 = vector.load %arg16[%c0_41, %c128] : memref<16x256xf32, #tpu.memory_space<vmem>>, vector<16x128xf32>
    tpu.vector_store %arg16[%c0_41, %c128], %23 {strides = array<i32>} : memref<16x256xf32, #tpu.memory_space<vmem>>, vector<16x128xf32>,
    return
  }
  func.func @transform_0(%arg0: i32) -> (i32, i32) {
    %c0_i32 = arith.constant 0 : i32
    %c0_i32_0 = arith.constant 0 : i32
    return %arg0, %c0_i32 : i32, i32
  }
  func.func @transform_1(%arg0: i32) -> (i32, i32) {
    %c0_i32 = arith.constant 0 : i32
    %c0_i32_0 = arith.constant 0 : i32
    %c0_i32_1 = arith.constant 0 : i32
    return %c0_i32, %c0_i32_0 : i32, i32
  }
  func.func @transform_2(%arg0: i32) -> (i32, i32) {
    %c0_i32 = arith.constant 0 : i32
    %c0_i32_0 = arith.constant 0 : i32
    %c0_i32_1 = arith.constant 0 : i32
    return %c0_i32, %c0_i32_0 : i32, i32
  }
  func.func @transform_3(%arg0: i32) -> (i32, i32) {
    %c0_i32 = arith.constant 0 : i32
    %c0_i32_0 = arith.constant 0 : i32
    %c0_i32_1 = arith.constant 0 : i32
    return %c0_i32, %c0_i32_0 : i32, i32
  }
  func.func @transform_4(%arg0: i32) -> (i32, i32) {
    %c0_i32 = arith.constant 0 : i32
    %c0_i32_0 = arith.constant 0 : i32
    %c0_i32_1 = arith.constant 0 : i32
    return %c0_i32, %c0_i32_0 : i32, i32
  }
  func.func @transform_5(%arg0: i32) -> (i32, i32) {
    %c0_i32 = arith.constant 0 : i32
    %c0_i32_0 = arith.constant 0 : i32
    %c0_i32_1 = arith.constant 0 : i32
    return %c0_i32, %c0_i32_0 : i32, i32
  }
  func.func @transform_6(%arg0: i32) -> (i32, i32) {
    %c0_i32 = arith.constant 0 : i32
    %c0_i32_0 = arith.constant 0 : i32
    %c0_i32_1 = arith.constant 0 : i32
    return %c0_i32, %c0_i32_0 : i32, i32
  }
  func.func @transform_7(%arg0: i32) -> (i32, i32) {
    %c0_i32 = arith.constant 0 : i32
    %c0_i32_0 = arith.constant 0 : i32
    %c0_i32_1 = arith.constant 0 : i32
    return %c0_i32, %c0_i32_0 : i32, i32
  }
  func.func @transform_8(%arg0: i32) -> (i32, i32) {
    %c0_i32 = arith.constant 0 : i32
    %c0_i32_0 = arith.constant 0 : i32
    %c0_i32_1 = arith.constant 0 : i32
    return %c0_i32, %c0_i32_0 : i32, i32
  }
  func.func @transform_9(%arg0: i32) -> (i32, i32) {
    %c0_i32 = arith.constant 0 : i32
    %c0_i32_0 = arith.constant 0 : i32
    %c0_i32_1 = arith.constant 0 : i32
    return %c0_i32, %c0_i32_0 : i32, i32
  }
  func.func @transform_10(%arg0: i32) -> (i32, i32) {
    %c0_i32 = arith.constant 0 : i32
    %c0_i32_0 = arith.constant 0 : i32
    %c0_i32_1 = arith.constant 0 : i32
    return %c0_i32, %c0_i32_0 : i32, i32
  }
  func.func @transform_11(%arg0: i32) -> (i32, i32) {
    %c0_i32 = arith.constant 0 : i32
    %c0_i32_0 = arith.constant 0 : i32
    %c0_i32_1 = arith.constant 0 : i32
    return %c0_i32, %c0_i32_0 : i32, i32
  }
  func.func @transform_12(%arg0: i32) -> (i32, i32) {
    %c0_i32 = arith.constant 0 : i32
    %c0_i32_0 = arith.constant 0 : i32
    %c0_i32_1 = arith.constant 0 : i32
    return %c0_i32, %c0_i32_0 : i32, i32
  }
  func.func @transform_13(%arg0: i32) -> (i32, i32) {
    %c0_i32 = arith.constant 0 : i32
    %c0_i32_0 = arith.constant 0 : i32
    return %arg0, %c0_i32 : i32, i32
  }
  func.func @transform_14(%arg0: i32) -> (i32, i32) {
    %c0_i32 = arith.constant 0 : i32
    %c0_i32_0 = arith.constant 0 : i32
    return %arg0, %c0_i32 : i32, i32
  }
  func.func @transform_15(%arg0: i32) -> (i32, i32) {
    %c0_i32 = arith.constant 0 : i32
    %c0_i32_0 = arith.constant 0 : i32
    return %arg0, %c0_i32 : i32, i32
  }
}

module attributes {stable_mosaic.version = 11 : i64} {
  func.func @_vae_kernel(%arg0: i32, %arg1: memref<16x128xbf16, #tpu.memory_space<vmem>>, %arg2: memref<128x128xbf16, #tpu.memory_space<vmem>>, %arg3: memref<1x128xf32, #tpu.memory_space<vmem>>, %arg4: memref<128x128xbf16, #tpu.memory_space<vmem>>, %arg5: memref<1x128xf32, #tpu.memory_space<vmem>>, %arg6: memref<128x256xbf16, #tpu.memory_space<vmem>>, %arg7: memref<1x256xf32, #tpu.memory_space<vmem>>, %arg8: memref<128x128xbf16, #tpu.memory_space<vmem>>, %arg9: memref<1x128xf32, #tpu.memory_space<vmem>>, %arg10: memref<128x128xbf16, #tpu.memory_space<vmem>>, %arg11: memref<1x128xf32, #tpu.memory_space<vmem>>, %arg12: memref<128x128xbf16, #tpu.memory_space<vmem>>, %arg13: memref<1x128xf32, #tpu.memory_space<vmem>>, %arg14: memref<16x128xbf16, #tpu.memory_space<vmem>>, %arg15: memref<16x128xbf16, #tpu.memory_space<vmem>>, %arg16: memref<16x256xf32, #tpu.memory_space<vmem>>) attributes {dimension_semantics = [#tpu.dimension_semantics<parallel>], iteration_bounds = array<i64: 1>, scalar_prefetch = 0 : i64, scratch_operands = 0 : i64, tpu.core_type = #tpu.core_type<tc>, window_params = [{transform_indices = @transform_0, window_bounds = array<i64: 16, 128>}, {pipeline_mode = #tpu.pipeline_mode<synchronous>, transform_indices = @transform_1, window_bounds = array<i64: 128, 128>}, {pipeline_mode = #tpu.pipeline_mode<synchronous>, transform_indices = @transform_2, window_bounds = array<i64: 1, 128>}, {pipeline_mode = #tpu.pipeline_mode<synchronous>, transform_indices = @transform_3, window_bounds = array<i64: 128, 128>}, {pipeline_mode = #tpu.pipeline_mode<synchronous>, transform_indices = @transform_4, window_bounds = array<i64: 1, 128>}, {pipeline_mode = #tpu.pipeline_mode<synchronous>, transform_indices = @transform_5, window_bounds = array<i64: 128, 256>}, {pipeline_mode = #tpu.pipeline_mode<synchronous>, transform_indices = @transform_6, window_bounds = array<i64: 1, 256>}, {pipeline_mode = #tpu.pipeline_mode<synchronous>, transform_indices = @transform_7, window_bounds = array<i64: 128, 128>}, {pipeline_mode = #tpu.pipeline_mode<synchronous>, transform_indices = @transform_8, window_bounds = array<i64: 1, 128>}, {pipeline_mode = #tpu.pipeline_mode<synchronous>, transform_indices = @transform_9, window_bounds = array<i64: 128, 128>}, {pipeline_mode = #tpu.pipeline_mode<synchronous>, transform_indices = @transform_10, window_bounds = array<i64: 1, 128>}, {pipeline_mode = #tpu.pipeline_mode<synchronous>, transform_indices = @transform_11, window_bounds = array<i64: 128, 128>}, {pipeline_mode = #tpu.pipeline_mode<synchronous>, transform_indices = @transform_12, window_bounds = array<i64: 1, 128>}, {transform_indices = @transform_13, window_bounds = array<i64: 16, 128>}, {transform_indices = @transform_14, window_bounds = array<i64: 16, 128>}, {transform_indices = @transform_15, window_bounds = array<i64: 16, 256>}]} {
    %c0 = arith.constant 0 : index
    %c0_0 = arith.constant 0 : index
    %0 = vector.load %arg1[%c0, %c0_0] : memref<16x128xbf16, #tpu.memory_space<vmem>>, vector<16x128xbf16>
    %c0_1 = arith.constant 0 : index
    %c0_2 = arith.constant 0 : index
    %1 = vector.load %arg2[%c0_1, %c0_2] : memref<128x128xbf16, #tpu.memory_space<vmem>>, vector<128x128xbf16>
    %cst = arith.constant dense<0.000000e+00> : vector<16x128xf32>
    %2 = tpu.matmul %0, %1, %cst {dimension_numbers = #tpu.dot_dimension_numbers<[1], [0], [0], [1], [0, 0, 1, 1], [], []>} : vector<16x128xbf16>, vector<128x128xbf16>, vector<16x128xf32> -> vector<16x128xf32>
    %c0_3 = arith.constant 0 : index
    %c0_4 = arith.constant 0 : index
    %3 = vector.load %arg3[%c0_3, %c0_4] : memref<1x128xf32, #tpu.memory_space<vmem>>, vector<1x128xf32>
    %4 = vector.broadcast %3 : vector<1x128xf32> to vector<16x128xf32>
    %5 = arith.addf %2, %4 : vector<16x128xf32>
    %cst_5 = arith.constant 0.000000e+00 : f32
    %6 = vector.broadcast %cst_5 : f32 to vector<16x128xf32>
    %7 = arith.maximumf %5, %6 : vector<16x128xf32>
    %8 = arith.truncf %7 : vector<16x128xf32> to vector<16x128xbf16>
    %c0_6 = arith.constant 0 : index
    %c0_7 = arith.constant 0 : index
    %9 = vector.load %arg4[%c0_6, %c0_7] : memref<128x128xbf16, #tpu.memory_space<vmem>>, vector<128x128xbf16>
    %cst_8 = arith.constant dense<0.000000e+00> : vector<16x128xf32>
    %10 = tpu.matmul %8, %9, %cst_8 {dimension_numbers = #tpu.dot_dimension_numbers<[1], [0], [0], [1], [0, 0, 1, 1], [], []>} : vector<16x128xbf16>, vector<128x128xbf16>, vector<16x128xf32> -> vector<16x128xf32>
    %c0_9 = arith.constant 0 : index
    %c0_10 = arith.constant 0 : index
    %11 = vector.load %arg5[%c0_9, %c0_10] : memref<1x128xf32, #tpu.memory_space<vmem>>, vector<1x128xf32>
    %12 = vector.broadcast %11 : vector<1x128xf32> to vector<16x128xf32>
    %13 = arith.addf %10, %12 : vector<16x128xf32>
    %cst_11 = arith.constant 0.000000e+00 : f32
    %14 = vector.broadcast %cst_11 : f32 to vector<16x128xf32>
    %15 = arith.maximumf %13, %14 : vector<16x128xf32>
    %16 = arith.truncf %15 : vector<16x128xf32> to vector<16x128xbf16>
    %c0_12 = arith.constant 0 : index
    %c0_13 = arith.constant 0 : index
    %17 = vector.load %arg6[%c0_12, %c0_13] : memref<128x256xbf16, #tpu.memory_space<vmem>>, vector<128x256xbf16>
    %cst_14 = arith.constant dense<0.000000e+00> : vector<16x256xf32>
    %18 = tpu.matmul %16, %17, %cst_14 {dimension_numbers = #tpu.dot_dimension_numbers<[1], [0], [0], [1], [0, 0, 1, 1], [], []>} : vector<16x128xbf16>, vector<128x256xbf16>, vector<16x256xf32> -> vector<16x256xf32>
    %c0_15 = arith.constant 0 : index
    %c0_16 = arith.constant 0 : index
    %19 = vector.load %arg7[%c0_15, %c0_16] : memref<1x256xf32, #tpu.memory_space<vmem>>, vector<1x256xf32>
    %20 = vector.broadcast %19 : vector<1x256xf32> to vector<16x256xf32>
    %21 = arith.addf %18, %20 : vector<16x256xf32>
    %22 = vector.extract_strided_slice %21 {offsets = [0, 0], sizes = [16, 128], strides = [1, 1]} : vector<16x256xf32> to vector<16x128xf32>
    %23 = vector.extract_strided_slice %21 {offsets = [0, 128], sizes = [16, 128], strides = [1, 1]} : vector<16x256xf32> to vector<16x128xf32>
    %c0_17 = arith.constant 0 : index
    %c0_18 = arith.constant 0 : index
    %24 = vector.load %arg14[%c0_17, %c0_18] : memref<16x128xbf16, #tpu.memory_space<vmem>>, vector<16x128xbf16>
    %25 = arith.extf %24 : vector<16x128xbf16> to vector<16x128xf32>
    %cst_19 = arith.constant 5.000000e-01 : f32
    %26 = vector.broadcast %cst_19 : f32 to vector<16x128xf32>
    %27 = arith.mulf %26, %23 : vector<16x128xf32>
    %28 = math.exp %27 : vector<16x128xf32>
    %29 = arith.mulf %25, %28 : vector<16x128xf32>
    %30 = arith.addf %22, %29 : vector<16x128xf32>
    %31 = arith.truncf %30 : vector<16x128xf32> to vector<16x128xbf16>
    %c0_20 = arith.constant 0 : index
    %c0_21 = arith.constant 0 : index
    %32 = vector.load %arg8[%c0_20, %c0_21] : memref<128x128xbf16, #tpu.memory_space<vmem>>, vector<128x128xbf16>
    %cst_22 = arith.constant dense<0.000000e+00> : vector<16x128xf32>
    %33 = tpu.matmul %31, %32, %cst_22 {dimension_numbers = #tpu.dot_dimension_numbers<[1], [0], [0], [1], [0, 0, 1, 1], [], []>} : vector<16x128xbf16>, vector<128x128xbf16>, vector<16x128xf32> -> vector<16x128xf32>
    %c0_23 = arith.constant 0 : index
    %c0_24 = arith.constant 0 : index
    %34 = vector.load %arg9[%c0_23, %c0_24] : memref<1x128xf32, #tpu.memory_space<vmem>>, vector<1x128xf32>
    %35 = vector.broadcast %34 : vector<1x128xf32> to vector<16x128xf32>
    %36 = arith.addf %33, %35 : vector<16x128xf32>
    %cst_25 = arith.constant 0.000000e+00 : f32
    %37 = vector.broadcast %cst_25 : f32 to vector<16x128xf32>
    %38 = arith.maximumf %36, %37 : vector<16x128xf32>
    %39 = arith.truncf %38 : vector<16x128xf32> to vector<16x128xbf16>
    %c0_26 = arith.constant 0 : index
    %c0_27 = arith.constant 0 : index
    %40 = vector.load %arg10[%c0_26, %c0_27] : memref<128x128xbf16, #tpu.memory_space<vmem>>, vector<128x128xbf16>
    %cst_28 = arith.constant dense<0.000000e+00> : vector<16x128xf32>
    %41 = tpu.matmul %39, %40, %cst_28 {dimension_numbers = #tpu.dot_dimension_numbers<[1], [0], [0], [1], [0, 0, 1, 1], [], []>} : vector<16x128xbf16>, vector<128x128xbf16>, vector<16x128xf32> -> vector<16x128xf32>
    %c0_29 = arith.constant 0 : index
    %c0_30 = arith.constant 0 : index
    %42 = vector.load %arg11[%c0_29, %c0_30] : memref<1x128xf32, #tpu.memory_space<vmem>>, vector<1x128xf32>
    %43 = vector.broadcast %42 : vector<1x128xf32> to vector<16x128xf32>
    %44 = arith.addf %41, %43 : vector<16x128xf32>
    %cst_31 = arith.constant 0.000000e+00 : f32
    %45 = vector.broadcast %cst_31 : f32 to vector<16x128xf32>
    %46 = arith.maximumf %44, %45 : vector<16x128xf32>
    %47 = arith.truncf %46 : vector<16x128xf32> to vector<16x128xbf16>
    %c0_32 = arith.constant 0 : index
    %c0_33 = arith.constant 0 : index
    %48 = vector.load %arg12[%c0_32, %c0_33] : memref<128x128xbf16, #tpu.memory_space<vmem>>, vector<128x128xbf16>
    %cst_34 = arith.constant dense<0.000000e+00> : vector<16x128xf32>
    %49 = tpu.matmul %47, %48, %cst_34 {dimension_numbers = #tpu.dot_dimension_numbers<[1], [0], [0], [1], [0, 0, 1, 1], [], []>} : vector<16x128xbf16>, vector<128x128xbf16>, vector<16x128xf32> -> vector<16x128xf32>
    %c0_35 = arith.constant 0 : index
    %c0_36 = arith.constant 0 : index
    %50 = vector.load %arg13[%c0_35, %c0_36] : memref<1x128xf32, #tpu.memory_space<vmem>>, vector<1x128xf32>
    %51 = vector.broadcast %50 : vector<1x128xf32> to vector<16x128xf32>
    %52 = arith.addf %49, %51 : vector<16x128xf32>
    %53 = arith.truncf %52 : vector<16x128xf32> to vector<16x128xbf16>
    %c0_37 = arith.constant 0 : index
    %c0_38 = arith.constant 0 : index
    %54 = vector.load %arg15[%c0_37, %c0_38] : memref<16x128xbf16, #tpu.memory_space<vmem>>, vector<16x128xbf16>
    tpu.vector_store %arg15[%c0_37, %c0_38], %53 {strides = array<i32>} : memref<16x128xbf16, #tpu.memory_space<vmem>>, vector<16x128xbf16>,
    %c0_39 = arith.constant 0 : index
    %c0_40 = arith.constant 0 : index
    %55 = vector.load %arg16[%c0_39, %c0_40] : memref<16x256xf32, #tpu.memory_space<vmem>>, vector<16x128xf32>
    tpu.vector_store %arg16[%c0_39, %c0_40], %22 {strides = array<i32>} : memref<16x256xf32, #tpu.memory_space<vmem>>, vector<16x128xf32>,
    %c0_41 = arith.constant 0 : index
    %c128 = arith.constant 128 : index
    %56 = vector.load %arg16[%c0_41, %c128] : memref<16x256xf32, #tpu.memory_space<vmem>>, vector<16x128xf32>
    tpu.vector_store %arg16[%c0_41, %c128], %23 {strides = array<i32>} : memref<16x256xf32, #tpu.memory_space<vmem>>, vector<16x128xf32>,
    return
  }
  func.func @transform_0(%arg0: i32) -> (i32, i32) {
    %c0_i32 = arith.constant 0 : i32
    %c0_i32_0 = arith.constant 0 : i32
    return %arg0, %c0_i32 : i32, i32
  }
  func.func @transform_1(%arg0: i32) -> (i32, i32) {
    %c0_i32 = arith.constant 0 : i32
    %c0_i32_0 = arith.constant 0 : i32
    %c0_i32_1 = arith.constant 0 : i32
    return %c0_i32, %c0_i32_0 : i32, i32
  }
  func.func @transform_2(%arg0: i32) -> (i32, i32) {
    %c0_i32 = arith.constant 0 : i32
    %c0_i32_0 = arith.constant 0 : i32
    %c0_i32_1 = arith.constant 0 : i32
    return %c0_i32, %c0_i32_0 : i32, i32
  }
  func.func @transform_3(%arg0: i32) -> (i32, i32) {
    %c0_i32 = arith.constant 0 : i32
    %c0_i32_0 = arith.constant 0 : i32
    %c0_i32_1 = arith.constant 0 : i32
    return %c0_i32, %c0_i32_0 : i32, i32
  }
  func.func @transform_4(%arg0: i32) -> (i32, i32) {
    %c0_i32 = arith.constant 0 : i32
    %c0_i32_0 = arith.constant 0 : i32
    %c0_i32_1 = arith.constant 0 : i32
    return %c0_i32, %c0_i32_0 : i32, i32
  }
  func.func @transform_5(%arg0: i32) -> (i32, i32) {
    %c0_i32 = arith.constant 0 : i32
    %c0_i32_0 = arith.constant 0 : i32
    %c0_i32_1 = arith.constant 0 : i32
    return %c0_i32, %c0_i32_0 : i32, i32
  }
  func.func @transform_6(%arg0: i32) -> (i32, i32) {
    %c0_i32 = arith.constant 0 : i32
    %c0_i32_0 = arith.constant 0 : i32
    %c0_i32_1 = arith.constant 0 : i32
    return %c0_i32, %c0_i32_0 : i32, i32
  }
  func.func @transform_7(%arg0: i32) -> (i32, i32) {
    %c0_i32 = arith.constant 0 : i32
    %c0_i32_0 = arith.constant 0 : i32
    %c0_i32_1 = arith.constant 0 : i32
    return %c0_i32, %c0_i32_0 : i32, i32
  }
  func.func @transform_8(%arg0: i32) -> (i32, i32) {
    %c0_i32 = arith.constant 0 : i32
    %c0_i32_0 = arith.constant 0 : i32
    %c0_i32_1 = arith.constant 0 : i32
    return %c0_i32, %c0_i32_0 : i32, i32
  }
  func.func @transform_9(%arg0: i32) -> (i32, i32) {
    %c0_i32 = arith.constant 0 : i32
    %c0_i32_0 = arith.constant 0 : i32
    %c0_i32_1 = arith.constant 0 : i32
    return %c0_i32, %c0_i32_0 : i32, i32
  }
  func.func @transform_10(%arg0: i32) -> (i32, i32) {
    %c0_i32 = arith.constant 0 : i32
    %c0_i32_0 = arith.constant 0 : i32
    %c0_i32_1 = arith.constant 0 : i32
    return %c0_i32, %c0_i32_0 : i32, i32
  }
  func.func @transform_11(%arg0: i32) -> (i32, i32) {
    %c0_i32 = arith.constant 0 : i32
    %c0_i32_0 = arith.constant 0 : i32
    %c0_i32_1 = arith.constant 0 : i32
    return %c0_i32, %c0_i32_0 : i32, i32
  }
  func.func @transform_12(%arg0: i32) -> (i32, i32) {
    %c0_i32 = arith.constant 0 : i32
    %c0_i32_0 = arith.constant 0 : i32
    %c0_i32_1 = arith.constant 0 : i32
    return %c0_i32, %c0_i32_0 : i32, i32
  }
  func.func @transform_13(%arg0: i32) -> (i32, i32) {
    %c0_i32 = arith.constant 0 : i32
    %c0_i32_0 = arith.constant 0 : i32
    return %arg0, %c0_i32 : i32, i32
  }
  func.func @transform_14(%arg0: i32) -> (i32, i32) {
    %c0_i32 = arith.constant 0 : i32
    %c0_i32_0 = arith.constant 0 : i32
    return %arg0, %c0_i32 : i32, i32
  }
  func.func @transform_15(%arg0: i32) -> (i32, i32) {
    %c0_i32 = arith.constant 0 : i32
    %c0_i32_0 = arith.constant 0 : i32
    return %arg0, %c0_i32 : i32, i32
  }
}

</mosaic_0001>

<bundles_post_ra>
// kernel: tpu_custom_call.1
= control target key start
LH: loop header
LB: loop body
LE: loop exit
PB: predicated region body
PF: predicated region fallthrough
CT: control target
= control target key end

     0   :  { %21 = vsyncpa [#allocation3], 0  ;;  %s1659_s0 = inlined_call_operand.hbm [shape: bf16[16,128], index: 0, kind: input, shape index: {}]   ;;  %s1660_s1 = inlined_call_operand.hbm [shape: bf16[128,128], index: 1, kind: input, shape index: {}]   ;;  %s1661_s2 = inlined_call_operand.vmem [shape: f32[1,128], index: 2, kind: input, shape index: {}]   ;;  %s1662_s3 = inlined_call_operand.hbm [shape: bf16[128,128], index: 3, kind: input, shape index: {}]   ;;  %s1663_s4 = inlined_call_operand.vmem [shape: f32[1,128], index: 4, kind: input, shape index: {}]   ;;  %s1664_s5 = inlined_call_operand.hbm [shape: bf16[128,256], index: 5, kind: input, shape index: {}]   ;;  %s1665_s6 = inlined_call_operand.vmem [shape: f32[1,256], index: 6, kind: input, shape index: {}]   ;;  %s1666_s7 = inlined_call_operand.hbm [shape: bf16[128,128], index: 7, kind: input, shape index: {}]   ;;  %s1667_s8 = inlined_call_operand.vmem [shape: f32[1,128], index: 8, kind: input, shape index: {}]   ;;  %s1668_s9 = inlined_call_operand.hbm [shape: bf16[128,128], index: 9, kind: input, shape index: {}]   ;;  %s1669_s10 = inlined_call_operand.vmem [shape: f32[1,128], index: 10, kind: input, shape index: {}]   ;;  %s1670_s11 = inlined_call_operand.hbm [shape: bf16[128,128], index: 11, kind: input, shape index: {}]   ;;  %s1671_s12 = inlined_call_operand.vmem [shape: f32[1,128], index: 12, kind: input, shape index: {}]   ;;  %s1672_s13 = inlined_call_operand.vmem [shape: bf16[16,128], index: 13, kind: input, shape index: {}]   ;;  %s1673_s14 = inlined_call_operand.hbm [shape: bf16[16,128], index: 14, kind: output, shape index: {0}]   ;;  %s1674_s15 = inlined_call_operand.hbm [shape: f32[16,256], index: 15, kind: output, shape index: {1}]  }
   0x1   :  { %22 = vsyncpa [#allocation6], 0 }
   0x2   :  { %23 = vsyncpa [#allocation9], 0 }
   0x3   :  { %24 = vsyncpa [#allocation12], 0 }
   0x4   :  { %25 = vsyncpa [#allocation4], 0 }
   0x5   :  { %26 = vsyncpa [#allocation16], 0  ;;  %s1442_s18 = smov [#allocation5]   ;;  %s1443_s20 = smov [#allocation8]  }
   0x6   :  { %s44_s19 = sshll.u32 %s1442_s18, 4  ;;  %s72_s21 = sshll.u32 %s1443_s20, 4  ;;  %s45_s19 = int_to_ptr.vmem [resolvable:$true] %s44_s19  ;;  %s73_s21 = int_to_ptr.vmem [resolvable:$true] %s72_s21 }
   0x7   :  { %s1258_s22 = scalar_lea.vmem %s45_s19, 1024  ;;  %p1263_p1 = scmp.lt.s32.totalorder %s45_s19, %s45_s19 }
   0x8   :  { %p1259_p0 = scmp.ne.s32.totalorder %s45_s19, %s1258_s22  ;;  %p1264_p2 = scmp.lt.s32.totalorder %s1258_s22, %s1258_s22 }
   0xa   :  { %p1265_p3 = por %p1264_p2, %p1263_p1 }
   0xc   :  { %p1266_p4 = pnand %p1265_p3, %p1259_p0 }
   0xe   :  { %1269 = shalt.err (!%p1266_p4)
}
   0xf   :  { %s1444_s23 = smov 64   ;;  %s1445_s24 = smov 4  }
  0x10   :  { %50 = dma.hbm_to_vmem [thread:$0]  %s1660_s1, 1024, %s45_s19, [#allocation6], %s1444_s23, %s1444_s23, %s1445_s24  }
  0x11   :  { %s1278_s27 = scalar_lea.vmem %s73_s21, 2048  ;;  %p1283_p6 = scmp.lt.s32.totalorder %s73_s21, %s73_s21 }
  0x12   :  { %p1279_p5 = scmp.ne.s32.totalorder %s73_s21, %s1278_s27  ;;  %p1284_p7 = scmp.lt.s32.totalorder %s1278_s27, %s1278_s27 }
  0x14   :  { %p1285_p8 = por %p1284_p7, %p1283_p6 }
  0x16   :  { %p1286_p9 = pnand %p1285_p8, %p1279_p5 }
  0x18   :  { %1289 = shalt.err (!%p1286_p9)
}
  0x19   :  { %s1446_s28 = smov 128   ;;  %s1447_s29 = smov 8  }
  0x1a   :  { %78 = dma.hbm_to_vmem [thread:$0]  %s1664_s5, 2048, %s73_s21, [#allocation9], %s1446_s28, %s1446_s28, %s1447_s29  }
  0x1b   :  { %s1448_s17 = smov [#allocation11]   ;;  %s1449_s20 = smov [#allocation2]  }
  0x1c   :  { %s100_s18 = sshll.u32 %s1448_s17, 4  ;;  %s32_s22 = sshll.u32 %s1449_s20, 4  ;;  %s101_s18 = int_to_ptr.vmem [resolvable:$true] %s100_s18  ;;  %s33_s22 = int_to_ptr.vmem [resolvable:$true] %s32_s22 }
  0x1d   :  { %s1298_s1 = scalar_lea.vmem %s101_s18, 1024  ;;  %p1303_p11 = scmp.lt.s32.totalorder %s101_s18, %s101_s18 }
  0x1e   :  { %p1299_p10 = scmp.ne.s32.totalorder %s101_s18, %s1298_s1  ;;  %p1304_p12 = scmp.lt.s32.totalorder %s1298_s1, %s1298_s1 }
  0x20   :  { %p1305_p13 = por %p1304_p12, %p1303_p11 }
  0x22   :  { %p1306_p0 = pnand %p1305_p13, %p1299_p10 }
  0x24   :  { %1309 = shalt.err (!%p1306_p0)
}
  0x25   :  { %106 = dma.hbm_to_vmem [thread:$0]  %s1668_s9, 1024, %s101_s18, [#allocation12], %s1444_s23, %s1444_s23, %s1445_s24  }
  0x26   :  { %s1318_s5 = scalar_lea.vmem %s33_s22, 128  ;;  %p1323_p2 = scmp.lt.s32.totalorder %s33_s22, %s33_s22 }
  0x27   :  { %p1319_p1 = scmp.ne.s32.totalorder %s33_s22, %s1318_s5  ;;  %p1324_p3 = scmp.lt.s32.totalorder %s1318_s5, %s1318_s5 }
  0x29   :  { %p1325_p4 = por %p1324_p3, %p1323_p2 }
  0x2b   :  { %p1326_p5 = pnand %p1325_p4, %p1319_p1 }
  0x2d   :  { %1329 = shalt.err (!%p1326_p5)
}
  0x2e   :  { %38 = dma.hbm_to_vmem [thread:$0]  %s1659_s0, 128, %s33_s22, [#allocation3], %s1444_s23, %s1444_s23, %s1445_s24  }
  0x2f   :  { %s1450_s27 = smov [#allocation7]   ;;  %s1451_s29 = smov [#allocation10]  }
  0x30   :  { %s58_s28 = sshll.u32 %s1450_s27, 4  ;;  %s86_s30 = sshll.u32 %s1451_s29, 4  ;;  %s59_s28 = int_to_ptr.vmem [resolvable:$true] %s58_s28  ;;  %s87_s30 = int_to_ptr.vmem [resolvable:$true] %s86_s30 }
  0x31   :  { %s1338_s9 = scalar_lea.vmem %s59_s28, 1024  ;;  %p1343_p7 = scmp.lt.s32.totalorder %s59_s28, %s59_s28 }
  0x32   :  { %p1339_p6 = scmp.ne.s32.totalorder %s59_s28, %s1338_s9  ;;  %p1344_p8 = scmp.lt.s32.totalorder %s1338_s9, %s1338_s9 }
  0x34   :  { %p1345_p9 = por %p1344_p8, %p1343_p7 }
  0x36   :  { %p1346_p10 = pnand %p1345_p9, %p1339_p6 }
  0x38   :  { %1349 = shalt.err (!%p1346_p10)
}
  0x39   :  { %64 = dma.hbm_to_vmem [thread:$0]  %s1662_s3, 1024, %s59_s28, [#allocation6], %s1444_s23, %s1444_s23, %s1445_s24  }
  0x3a   :  { %s1358_s0 = scalar_lea.vmem %s87_s30, 1024  ;;  %p1363_p12 = scmp.lt.s32.totalorder %s87_s30, %s87_s30 }
  0x3b   :  { %p1359_p11 = scmp.ne.s32.totalorder %s87_s30, %s1358_s0  ;;  %p1364_p13 = scmp.lt.s32.totalorder %s1358_s0, %s1358_s0 }
  0x3d   :  { %p1365_p0 = por %p1364_p13, %p1363_p12 }
  0x3f   :  { %p1366_p1 = pnand %p1365_p0, %p1359_p11 }
  0x41   :  { %1369 = shalt.err (!%p1366_p1)
}
  0x42   :  { %92 = dma.hbm_to_vmem [thread:$0]  %s1666_s7, 1024, %s87_s30, [#allocation9], %s1444_s23, %s1444_s23, %s1445_s24  }
  0x43   :  { %s1452_s22 = smov [#allocation13]  }
  0x44   :  { %s114_s1 = sshll.u32 %s1452_s22, 4  ;;  %s115_s1 = int_to_ptr.vmem [resolvable:$true] %s114_s1 }
  0x45   :  { %s1378_s19 = scalar_lea.vmem %s115_s1, 1024  ;;  %p1383_p3 = scmp.lt.s32.totalorder %s115_s1, %s115_s1 }
  0x46   :  { %p1379_p2 = scmp.ne.s32.totalorder %s115_s1, %s1378_s19  ;;  %p1384_p4 = scmp.lt.s32.totalorder %s1378_s19, %s1378_s19 }
  0x48   :  { %p1385_p5 = por %p1384_p4, %p1383_p3 }
  0x4a   :  { %p1386_p6 = pnand %p1385_p5, %p1379_p2 }
  0x4c   :  { %1389 = shalt.err (!%p1386_p6)
}
  0x4d   :  { %120 = dma.hbm_to_vmem [thread:$0]  %s1670_s11, 1024, %s115_s1, [#allocation12], %s1444_s23, %s1444_s23, %s1445_s24  }
  0x4e   :  { %1430 = dma.done.wait [#allocation3], 128  }
  0x4f   :  { %1431 = vsyncadd [#allocation3], 4294967168 }
  0x50   :  { %1432 = dma.done.wait [#allocation6], 2048  }
  0x51   :  { %1433 = vsyncadd [#allocation6], 4294965248 }
  0x52   :  { %1434 = dma.done.wait [#allocation9], 3072  }
  0x53   :  { %1435 = vsyncadd [#allocation9], 4294964224 }
  0x54   :  { %1436 = dma.done.wait [#allocation12], 2048  }
  0x55   :  { %1437 = vsyncadd [#allocation12], 4294965248  ;;  %v1453_v0 = vmov 0.0   ;;  %vm1454_vm0 = vmmov 0   ;;  %v1181_v1 = vld [vmem:[#allocation5 + $0x38] sm:$0xff]   ;;  %v1182_v2 = vld [vmem:[#allocation5 + $0x30] sm:$0xff]  }
  0x56   :  { %1063 = vmatprep.subr.bf16.mxu0 %v1453_v0  ;;  %1079 = vmatprep.mubr.msk.bf16.mxu0 %vm1454_vm0, %v1453_v0  ;;  %v1183_v3 = vld [vmem:[#allocation5 + $0x28] sm:$0xff]   ;;  %v1190_v4 = vld [vmem:[#allocation7 + $0x38] sm:$0xff]   ;;  %v1184_v5 = vld [vmem:[#allocation5 + $0x20] sm:$0xff]   ;;  %v1455_v44 = vmov 0   ;;  %s1456_s29 = smov [#allocation15]  }
  0x57   :  { %1083 = vmatprep.subr.bf16.mxu1 %v1453_v0  ;;  %1099 = vmatprep.mubr.msk.bf16.mxu1 %vm1454_vm0, %v1453_v0  ;;  %v1191_v6 = vld [vmem:[#allocation7 + $0x30] sm:$0xff]   ;;  %v1185_v7 = vld [vmem:[#allocation5 + $0x18] sm:$0xff]   ;;  %v1192_v8 = vld [vmem:[#allocation7 + $0x28] sm:$0xff]   ;;  %s924_s30 = sshll.u32 %s1456_s29, 4  ;;  %s925_s30 = int_to_ptr.vmem [resolvable:$true] %s924_s30 }
  0x58   :  { %1064 = vmatpush3.bf16.msra.mxu0 %v1181_v1  ;;  %1084 = vmatpush3.bf16.msra.mxu1 %v1190_v4  ;;  %v1186_v9 = vld [vmem:[#allocation5 + $0x10] sm:$0xff]   ;;  %v1193_v10 = vld [vmem:[#allocation7 + $0x20] sm:$0xff]   ;;  %v1187_v11 = vld [vmem:[#allocation5 + $0x8] sm:$0xff]   ;;  %s1390_s9 = scalar_lea.vmem %s925_s30, 512  ;;  %p1395_p8 = scmp.lt.s32.totalorder %s925_s30, %s925_s30 }
  0x59   :  { %1065 = vmatprep.subr.bf16.mxu0 %v1453_v0  ;;  %1085 = vmatprep.subr.bf16.mxu1 %v1453_v0  ;;  %v1194_v12 = vld [vmem:[#allocation7 + $0x18] sm:$0xff]   ;;  %v1188_v13 = vld [vmem:[#allocation5] sm:$0xff]   ;;  %v1195_v15 = vld [vmem:[#allocation7 + $0x10] sm:$0xff]   ;;  %p1391_p7 = scmp.ne.s32.totalorder %s925_s30, %s1390_s9  ;;  %p1396_p9 = scmp.lt.s32.totalorder %s1390_s9, %s1390_s9 }
  0x5a   :  { %v1189_v14 = vld [vmem:[#allocation2] sm:$0xff]   ;;  %v1196_v16 = vld [vmem:[#allocation7 + $0x8] sm:$0xff]   ;;  %v1197_v17 = vld [vmem:[#allocation7] sm:$0xff]  }
  0x5b   :  { %v1198_v18 = vld [vmem:[#allocation8 + $0x70] ss:$8 sps:$4 sm:$0xff]   ;;  %v1200_v19 = vld [vmem:[#allocation8 + $0x74] ss:$8 sps:$4 sm:$0xff]   ;;  %v1203_v20 = vld [vmem:[#allocation8 + $0x64] ss:$8 sps:$4 sm:$0xff]   ;;  %p1397_p10 = por %p1396_p9, %p1395_p8 }
  0x5c   :  { %1066 = vmatpush3.bf16.msra.mxu0 %v1182_v2  ;;  %1086 = vmatpush3.bf16.msra.mxu1 %v1191_v6  ;;  %v1201_v21 = vld [vmem:[#allocation8 + $0x60] ss:$8 sps:$4 sm:$0xff]   ;;  %v1206_v22 = vld [vmem:[#allocation8 + $0x54] ss:$8 sps:$4 sm:$0xff]   ;;  %v1204_v23 = vld [vmem:[#allocation8 + $0x50] ss:$8 sps:$4 sm:$0xff]  }
  0x5d   :  { %1067 = vmatprep.subr.bf16.mxu0 %v1453_v0  ;;  %1087 = vmatprep.subr.bf16.mxu1 %v1453_v0  ;;  %v1209_v24 = vld [vmem:[#allocation8 + $0x44] ss:$8 sps:$4 sm:$0xff]   ;;  %v1207_v25 = vld [vmem:[#allocation8 + $0x40] ss:$8 sps:$4 sm:$0xff]   ;;  %v1212_v26 = vld [vmem:[#allocation8 + $0x34] ss:$8 sps:$4 sm:$0xff]   ;;  %p1398_p11 = pnand %p1397_p10, %p1391_p7 }
  0x5e   :  { %v1210_v27 = vld [vmem:[#allocation8 + $0x30] ss:$8 sps:$4 sm:$0xff]   ;;  %v1215_v28 = vld [vmem:[#allocation8 + $0x24] ss:$8 sps:$4 sm:$0xff]   ;;  %v1213_v29 = vld [vmem:[#allocation8 + $0x20] ss:$8 sps:$4 sm:$0xff]  }
  0x5f   :  { %v943_v30 = vld [vmem:[%s1661_s2] ss:$0 sm:$0xff]  ;;  %v1218_v40 = vld [vmem:[#allocation8 + $0x14] ss:$8 sps:$4 sm:$0xff]   ;;  %v1221_v42 = vld [vmem:[#allocation8 + $0x4] ss:$8 sps:$4 sm:$0xff]  }
  0x60   :  { %1068 = vmatpush3.bf16.msra.mxu0 %v1183_v3  ;;  %1088 = vmatpush3.bf16.msra.mxu1 %v1192_v8  ;;  %v1216_v41 = vld [vmem:[#allocation8 + $0x10] ss:$8 sps:$4 sm:$0xff]   ;;  %v1219_v43 = vld [vmem:[#allocation8] ss:$8 sps:$4 sm:$0xff]  }
  0x61   :  { %1069 = vmatprep.subr.bf16.mxu0 %v1453_v0  ;;  %1089 = vmatprep.subr.bf16.mxu1 %v1453_v0  ;;  %v953_v45 = vld [vmem:[%s1663_s4] ss:$0 sm:$0xff]  ;;  %v1223_v56 = vld [vmem:[#allocation10 + $0x30] sm:$0xff]   ;;  %v1224_v57 = vld [vmem:[#allocation10 + $0x28] sm:$0xff]  }
  0x62   :  { %v1222_v55 = vld [vmem:[#allocation10 + $0x38] sm:$0xff]   ;;  %v1225_v58 = vld [vmem:[#allocation10 + $0x20] sm:$0xff]   ;;  %v1227_v60 = vld [vmem:[#allocation10 + $0x10] sm:$0xff]  }
  0x63   :  { %v1226_v59 = vld [vmem:[#allocation10 + $0x18] sm:$0xff]   ;;  %v1228_v61 = vld [vmem:[#allocation10 + $0x8] sm:$0xff]   ;;  %v1229_v62 = vld [vmem:[#allocation10] sm:$0xff]  }
  0x64   :  { %1070 = vmatpush3.bf16.msra.mxu0 %v1184_v5  ;;  %1090 = vmatpush3.bf16.msra.mxu1 %v1193_v10  ;;  %v1230_v63 = vld [vmem:[#allocation11 + $0x38] sm:$0xff]   ;;  %v1231_v1 = vld [vmem:[#allocation11 + $0x30] sm:$0xff]   ;;  %v1232_v2 = vld [vmem:[#allocation11 + $0x28] sm:$0xff]   ;;  %v403_v5 = vlaneseq }
  0x65   :  { %1071 = vmatprep.subr.bf16.mxu0 %v1453_v0  ;;  %1091 = vmatprep.subr.bf16.mxu1 %v1453_v0  ;;  %v1233_v3 = vld [vmem:[#allocation11 + $0x20] sm:$0xff]   ;;  %v1234_v4 = vld [vmem:[#allocation11 + $0x18] sm:$0xff]  }
  0x66   :  { %v404_v6 = vshrl.u32 %v403_v5, 7  ;;  %v401_v8 = vld [vmem:[%s1665_s6] sm:$0x3] }
  0x68   :  { %1072 = vmatpush3.bf16.msra.mxu0 %v1185_v7  ;;  %1092 = vmatpush3.bf16.msra.mxu1 %v1194_v12  ;;  %v405_v7 = vsub.s32 0, %v404_v6 }
  0x69   :  { %1073 = vmatprep.subr.bf16.mxu0 %v1453_v0  ;;  %1093 = vmatprep.subr.bf16.mxu1 %v1453_v0 }
  0x6a   :  { %v406_v10 = vrot.slane %v401_v8, %v405_v7 }
  0x6c   :  { %1074 = vmatpush3.bf16.msra.mxu0 %v1186_v9  ;;  %1094 = vmatpush3.bf16.msra.mxu1 %v1195_v15  ;;  %v409_v9 = vsub.s32 1, %v404_v6 }
  0x6d   :  { %1075 = vmatprep.subr.bf16.mxu0 %v1453_v0  ;;  %1095 = vmatprep.subr.bf16.mxu1 %v1453_v0 }
  0x70   :  { %1076 = vmatpush3.bf16.msra.mxu0 %v1187_v11  ;;  %1096 = vmatpush3.bf16.msra.mxu1 %v1196_v16  ;;  %v410_v11 = vrot.slane %v401_v8, %v409_v9 }
  0x71   :  { %1077 = vmatprep.subr.bf16.mxu0 %v1453_v0  ;;  %1097 = vmatprep.subr.bf16.mxu1 %v1453_v0 }
  0x74   :  { %1078 = vmatpush3.bf16.msra.mxu0 %v1188_v13  ;;  %1098 = vmatpush3.bf16.msra.mxu1 %v1197_v17 }
  0x75   :  { %1103 = vmatprep.subr.bf16.mxu1 %v1453_v0  ;;  %493 = vmatprep.subr.bf16.mxu0 %v1200_v19 }
  0x77   :  { %1080 = vmatmul.mubr.bf16.vlgmr.msra.gmra.mxu0 %v1189_v14 }
  0x78   :  { %494 = vmatpush1.bf16.msra.mxu0 %v1198_v18  ;;  %525 = vmatprep.mubr.bf16.mxu0 %v1455_v44 }
  0x79   :  { %495 = vmatprep.subr.bf16.mxu0 %v1203_v20 }
  0x7c   :  { %496 = vmatpush1.bf16.msra.mxu0 %v1201_v21 }
  0x7d   :  { %497 = vmatprep.subr.bf16.mxu0 %v1206_v22 }
  0x80   :  { %498 = vmatpush1.bf16.msra.mxu0 %v1204_v23 }
  0x81   :  { %499 = vmatprep.subr.bf16.mxu0 %v1209_v24  ;;  %v1010_v24 = vld [vmem:[%s1672_s13] sm:$0xff]  }
  0x84   :  { %500 = vmatpush1.bf16.msra.mxu0 %v1207_v25  ;;  %v1011_v25 = vunpack.c.l.bf16 %v1010_v24 }
  0x85   :  { %501 = vmatprep.subr.bf16.mxu0 %v1212_v26 }
  0x88   :  { %502 = vmatpush1.bf16.msra.mxu0 %v1210_v27  ;;  %v1012_v27 = vunpack.c.h.bf16 %v1010_v24 }
  0x89   :  { %503 = vmatprep.subr.bf16.mxu0 %v1215_v28 }
  0x8c   :  { %504 = vmatpush1.bf16.msra.mxu0 %v1213_v29 }
  0x8d   :  { %505 = vmatprep.subr.bf16.mxu0 %v1218_v40  ;;  %v1241_v40 = vld [vmem:[#allocation13 + $0x20] sm:$0xff]  }
  0x90   :  { %506 = vmatpush1.bf16.msra.mxu0 %v1216_v41  ;;  %v1242_v41 = vld [vmem:[#allocation13 + $0x18] sm:$0xff]  }
  0x91   :  { %507 = vmatprep.subr.bf16.mxu0 %v1221_v42  ;;  %v978_v42 = vld [vmem:[%s1667_s8] ss:$0 sm:$0xff] }
  0x94   :  { %508 = vmatpush1.bf16.msra.mxu0 %v1219_v43 }
  0x95   :  { %1123 = vmatprep.subr.bf16.mxu0 %v1453_v0 }
 0x137   :  { %v260_v31 = vpop.f32.mrf.mxu0 }
 0x138   :  { %v261_v33 = vadd.f32 %v943_v30, %v260_v31 }
 0x139   :  { %v1081_v32 = vpop.f32.mrf.mxu0 }
 0x13a   :  { %v267_v37 = vmax.f32 %v261_v33, 0.0 }
 0x13b   :  { %v263_v34 = vpop.f32.mrf.mxu0 }
 0x13c   :  { %v264_v35 = vadd.f32 %v943_v30, %v263_v34  ;;  %v1235_v34 = vld [vmem:[#allocation11 + $0x10] sm:$0xff]  }
 0x13d   :  { %v1082_v36 = vpop.f32.mrf.mxu0 }
 0x13e   :  { %v268_v38 = vmax.f32 %v264_v35, 0.0  ;;  %v1236_v35 = vld [vmem:[#allocation11 + $0x8] sm:$0xff]   ;;  %v1237_v36 = vld [vmem:[#allocation11] sm:$0xff]  }
 0x140   :  { %v269_v39 = vpack.c.bf16 %v268_v38, %v267_v37  ;;  %v1238_v37 = vld [vmem:[#allocation13 + $0x38] sm:$0xff]   ;;  %v1239_v38 = vld [vmem:[#allocation13 + $0x30] sm:$0xff]  }
 0x142   :  { %1100 = vmatmul.mubr.bf16.vlgmr.msra.gmra.mxu1 %v269_v39  ;;  %v1240_v39 = vld [vmem:[#allocation13 + $0x28] sm:$0xff]  }
 0x143   :  { %1119 = vmatprep.mubr.msk.bf16.mxu1 %vm1454_vm0, %v1453_v0  ;;  %1104 = vmatpush3.bf16.msra.mxu1 %v1222_v55  ;;  %v987_v55 = vld [vmem:[%s1669_s10] ss:$0 sm:$0xff] }
 0x144   :  { %1105 = vmatprep.subr.bf16.mxu1 %v1453_v0 }
 0x147   :  { %1106 = vmatpush3.bf16.msra.mxu1 %v1223_v56 }
 0x148   :  { %1107 = vmatprep.subr.bf16.mxu1 %v1453_v0 }
 0x14b   :  { %1108 = vmatpush3.bf16.msra.mxu1 %v1224_v57 }
 0x14c   :  { %1109 = vmatprep.subr.bf16.mxu1 %v1453_v0 }
 0x14f   :  { %1110 = vmatpush3.bf16.msra.mxu1 %v1225_v58 }
 0x150   :  { %1111 = vmatprep.subr.bf16.mxu1 %v1453_v0 }
 0x153   :  { %1112 = vmatpush3.bf16.msra.mxu1 %v1226_v59 }
 0x154   :  { %1113 = vmatprep.subr.bf16.mxu1 %v1453_v0 }
 0x157   :  { %1114 = vmatpush3.bf16.msra.mxu1 %v1227_v60 }
 0x158   :  { %1115 = vmatprep.subr.bf16.mxu1 %v1453_v0 }
 0x15b   :  { %1116 = vmatpush3.bf16.msra.mxu1 %v1228_v61 }
 0x15c   :  { %1117 = vmatprep.subr.bf16.mxu1 %v1453_v0 }
 0x15f   :  { %1118 = vmatpush3.bf16.msra.mxu1 %v1229_v62 }
 0x160   :  { %1143 = vmatprep.subr.bf16.mxu1 %v1453_v0 }
 0x202   :  { %v375_v46 = vpop.f32.mrf.mxu1 }
 0x203   :  { %v376_v48 = vadd.f32 %v953_v45, %v375_v46 }
 0x204   :  { %v1101_v47 = vpop.f32.mrf.mxu1 }
 0x205   :  { %v382_v52 = vmax.f32 %v376_v48, 0.0 }
 0x206   :  { %v378_v49 = vpop.f32.mrf.mxu1 }
 0x207   :  { %v379_v50 = vadd.f32 %v953_v45, %v378_v49 }
 0x208   :  { %v1102_v51 = vpop.f32.mrf.mxu1 }
 0x209   :  { %v383_v53 = vmax.f32 %v379_v50, 0.0 }
 0x20b   :  { %v384_v54 = vpack.c.bf16 %v383_v53, %v382_v52  ;;  %v1243_v52 = vld [vmem:[#allocation13 + $0x10] sm:$0xff]   ;;  %v1244_v53 = vld [vmem:[#allocation13 + $0x8] sm:$0xff]  }
 0x20d   :  { %526 = vmatmul.mubr.bf16.vlgmr.msra.gmra.mxu0 %v384_v54  ;;  %v1245_v54 = vld [vmem:[#allocation13] sm:$0xff]  }
 0x20e   :  { %1139 = vmatprep.mubr.msk.bf16.mxu0 %vm1454_vm0, %v1453_v0  ;;  %1124 = vmatpush3.bf16.msra.mxu0 %v1230_v63 }
 0x20f   :  { %1125 = vmatprep.subr.bf16.mxu0 %v1453_v0 }
 0x212   :  { %1126 = vmatpush3.bf16.msra.mxu0 %v1231_v1 }
 0x213   :  { %1127 = vmatprep.subr.bf16.mxu0 %v1453_v0 }
 0x216   :  { %1128 = vmatpush3.bf16.msra.mxu0 %v1232_v2 }
 0x217   :  { %1129 = vmatprep.subr.bf16.mxu0 %v1453_v0 }
 0x21a   :  { %1130 = vmatpush3.bf16.msra.mxu0 %v1233_v3 }
 0x21b   :  { %1131 = vmatprep.subr.bf16.mxu0 %v1453_v0 }
 0x21e   :  { %1132 = vmatpush3.bf16.msra.mxu0 %v1234_v4 }
 0x21f   :  { %1133 = vmatprep.subr.bf16.mxu0 %v1453_v0 }
 0x222   :  { %1134 = vmatpush3.bf16.msra.mxu0 %v1235_v34 }
 0x223   :  { %1135 = vmatprep.subr.bf16.mxu0 %v1453_v0 }
 0x226   :  { %1136 = vmatpush3.bf16.msra.mxu0 %v1236_v35 }
 0x227   :  { %1137 = vmatprep.subr.bf16.mxu0 %v1453_v0 }
 0x22a   :  { %1138 = vmatpush3.bf16.msra.mxu0 %v1237_v36 }
 0x2cd   :  { %v527_v12 = vpop.f32.mrf.mxu0 }
 0x2ce   :  { %v528_v13 = vadd.f32 %v527_v12, %v406_v10 }
 0x2cf   :  { %v529_v14 = vpop.f32.mrf.mxu0 }
 0x2d0   :  { %903 = vst [vmem:[#allocation15] sm:$0xff] %v528_v13  ;;  %v530_v15 = vadd.f32 %v529_v14, %v410_v11 }
 0x2d1   :  { %v531_v16 = vpop.f32.mrf.mxu0 }
 0x2d2   :  { %v540_v17 = vmul.f32 0.5, %v530_v15  ;;  %905 = vst [vmem:[#allocation15 + $0x8] sm:$0xff] %v530_v15  ;;  %v532_v18 = vadd.f32 %v531_v16, %v406_v10 }
 0x2d3   :  { %v533_v19 = vpop.f32.mrf.mxu0 }
 0x2d4   :  { %v542_v20 = vmul.f32 1.442695, %v540_v17  ;;  %904 = vst [vmem:[#allocation15 + $0x10] sm:$0xff] %v532_v18  ;;  %v534_v21 = vadd.f32 %v533_v19, %v410_v11 }
 0x2d6   :  { %1246 = vpow2.f32 %v542_v20  ;;  %v541_v22 = vmul.f32 0.5, %v534_v21  ;;  %906 = vst [vmem:[#allocation15 + $0x18] sm:$0xff] %v534_v21 }
 0x2d8   :  { %v544_v23 = vmul.f32 1.442695, %v541_v22 }
 0x2da   :  { %1248 = vpow2.f32 %v544_v23 }
 0x2e3   :  { %v1247_v26 = vpop.eup %1246 }
 0x2e4   :  { %v546_v28 = vmul.f32 %v1247_v26, %v1011_v25 }
 0x2e6   :  { %v548_v31 = vadd.f32 %v546_v28, %v528_v13 }
 0x2e7   :  { %v1249_v29 = vpop.eup %1248 }
 0x2e8   :  { %v547_v30 = vmul.f32 %v1249_v29, %v1012_v27 }
 0x2ea   :  { %v549_v32 = vadd.f32 %v547_v30, %v532_v18 }
 0x2ec   :  { %v550_v33 = vpack.c.bf16 %v549_v32, %v548_v31 }
 0x2ee   :  { %1120 = vmatmul.mubr.bf16.vlgmr.msra.gmra.mxu1 %v550_v33 }
 0x2ef   :  { %1159 = vmatprep.mubr.msk.bf16.mxu1 %vm1454_vm0, %v1453_v0  ;;  %1144 = vmatpush3.bf16.msra.mxu1 %v1238_v37 }
 0x2f0   :  { %1145 = vmatprep.subr.bf16.mxu1 %v1453_v0 }
 0x2f3   :  { %1146 = vmatpush3.bf16.msra.mxu1 %v1239_v38 }
 0x2f4   :  { %1147 = vmatprep.subr.bf16.mxu1 %v1453_v0 }
 0x2f7   :  { %1148 = vmatpush3.bf16.msra.mxu1 %v1240_v39 }
 0x2f8   :  { %1149 = vmatprep.subr.bf16.mxu1 %v1453_v0 }
 0x2fb   :  { %1150 = vmatpush3.bf16.msra.mxu1 %v1241_v40 }
 0x2fc   :  { %1151 = vmatprep.subr.bf16.mxu1 %v1453_v0 }
 0x2ff   :  { %1152 = vmatpush3.bf16.msra.mxu1 %v1242_v41 }
 0x300   :  { %1153 = vmatprep.subr.bf16.mxu1 %v1453_v0 }
 0x303   :  { %1154 = vmatpush3.bf16.msra.mxu1 %v1243_v52 }
 0x304   :  { %1155 = vmatprep.subr.bf16.mxu1 %v1453_v0 }
 0x307   :  { %1156 = vmatpush3.bf16.msra.mxu1 %v1244_v53 }
 0x308   :  { %1157 = vmatprep.subr.bf16.mxu1 %v1453_v0 }
 0x30b   :  { %1158 = vmatpush3.bf16.msra.mxu1 %v1245_v54 }
 0x3ae   :  { %v656_v43 = vpop.f32.mrf.mxu1 }
 0x3af   :  { %v657_v45 = vadd.f32 %v978_v42, %v656_v43 }
 0x3b0   :  { %v1121_v44 = vpop.f32.mrf.mxu1 }
 0x3b1   :  { %v663_v49 = vmax.f32 %v657_v45, 0.0 }
 0x3b2   :  { %v659_v46 = vpop.f32.mrf.mxu1 }
 0x3b3   :  { %v660_v47 = vadd.f32 %v978_v42, %v659_v46 }
 0x3b4   :  { %v1122_v48 = vpop.f32.mrf.mxu1 }
 0x3b5   :  { %v664_v50 = vmax.f32 %v660_v47, 0.0 }
 0x3b7   :  { %v665_v51 = vpack.c.bf16 %v664_v50, %v663_v49 }
 0x3b9   :  { %1140 = vmatmul.mubr.bf16.vlgmr.msra.gmra.mxu0 %v665_v51 }
 0x479   :  { %v771_v56 = vpop.f32.mrf.mxu0 }
 0x47a   :  { %v772_v58 = vadd.f32 %v987_v55, %v771_v56 }
 0x47b   :  { %v1141_v57 = vpop.f32.mrf.mxu0 }
 0x47c   :  { %v778_v62 = vmax.f32 %v772_v58, 0.0 }
 0x47d   :  { %v774_v59 = vpop.f32.mrf.mxu0 }
 0x47e   :  { %v775_v60 = vadd.f32 %v987_v55, %v774_v59 }
 0x47f   :  { %v1142_v61 = vpop.f32.mrf.mxu0 }
 0x480   :  { %v779_v63 = vmax.f32 %v775_v60, 0.0 }
 0x482   :  { %v780_v1 = vpack.c.bf16 %v779_v63, %v778_v62 }
 0x484   :  { %1160 = vmatmul.mubr.bf16.vlgmr.msra.gmra.mxu1 %v780_v1 }
 0x485   :  { %1401 = shalt.err (!%p1398_p11)
}
 0x486   :  { %s1457_s10 = smov 256   ;;  %s1458_s16 = smov 16   ;;  %v996_v2 = vld [vmem:[%s1671_s12] ss:$0 sm:$0xff] }
 0x487   :  { %930 = dma.vmem_to_hbm [thread:$0]  %s925_s30, 512, %s1674_s15, [#allocation16], %s1457_s10, %s1457_s10, %s1458_s16  }
 0x488   :  { %s1459_s22 = smov [#allocation14]  }
 0x489   :  { %s912_s1 = sshll.u32 %s1459_s22, 4  ;;  %s913_s1 = int_to_ptr.vmem [resolvable:$true] %s912_s1 }
 0x48a   :  { %s1410_s19 = scalar_lea.vmem %s913_s1, 128  ;;  %p1415_p13 = scmp.lt.s32.totalorder %s913_s1, %s913_s1 }
 0x48b   :  { %p1411_p12 = scmp.ne.s32.totalorder %s913_s1, %s1410_s19  ;;  %p1416_p0 = scmp.lt.s32.totalorder %s1410_s19, %s1410_s19 }
 0x48d   :  { %p1417_p1 = por %p1416_p0, %p1415_p13 }
 0x48f   :  { %p1418_p2 = pnand %p1417_p1, %p1411_p12 }
 0x544   :  { %v886_v0 = vpop.f32.mrf.mxu1 }
 0x545   :  { %v887_v5 = vadd.f32 %v996_v2, %v886_v0 }
 0x546   :  { %v1161_v3 = vpop.f32.mrf.mxu1 }
 0x548   :  { %v889_v4 = vpop.f32.mrf.mxu1 }
 0x549   :  { %v890_v6 = vadd.f32 %v996_v2, %v889_v4 }
 0x54a   :  { %v1162_v7 = vpop.f32.mrf.mxu1 }
 0x54b   :  { %v1016_v8 = vpack.c.bf16 %v890_v6, %v887_v5 }
 0x54d   :  { %1017 = vst [vmem:[#allocation14] sm:$0xff] %v1016_v8  }
 0x54e   :  { %1421 = shalt.err (!%p1418_p2)
}
 0x54f   :  { %918 = dma.vmem_to_hbm [thread:$0]  %s913_s1, 128, %s1673_s14, [#allocation4], %s1444_s23, %s1444_s23, %s1445_s24  }
 0x550   :  { %1438 = dma.done.wait [#allocation4], 128  }
 0x551   :  { %1439 = vsyncadd [#allocation4], 4294967168 }
 0x552   :  { %1440 = dma.done.wait [#allocation16], 512  }
 0x553   :  { %1441 = vsyncadd [#allocation16], 4294966784 }
 0x554   :  { %937 = vsyncpa [#allocation3], 1 }
 0x555   :  { %938 = vsyncpa [#allocation6], 1 }
 0x556   :  { %939 = vsyncpa [#allocation9], 1 }
 0x557   :  { %940 = vsyncpa [#allocation12], 1 }
 0x558   :  { %941 = vsyncpa [#allocation4], 1 }
 0x559   :  { %942 = vsyncpa [#allocation16], 1 }

// kernel: tpu_custom_call.1
= control target key start
LH: loop header
LB: loop body
LE: loop exit
PB: predicated region body
PF: predicated region fallthrough
CT: control target
= control target key end

     0   :  { %21 = vsyncpa [#allocation3], 0  ;;  %s1659_s0 = inlined_call_operand.hbm [shape: bf16[16,128], index: 0, kind: input, shape index: {}]   ;;  %s1660_s1 = inlined_call_operand.hbm [shape: bf16[128,128], index: 1, kind: input, shape index: {}]   ;;  %s1661_s2 = inlined_call_operand.vmem [shape: f32[1,128], index: 2, kind: input, shape index: {}]   ;;  %s1662_s3 = inlined_call_operand.hbm [shape: bf16[128,128], index: 3, kind: input, shape index: {}]   ;;  %s1663_s4 = inlined_call_operand.vmem [shape: f32[1,128], index: 4, kind: input, shape index: {}]   ;;  %s1664_s5 = inlined_call_operand.hbm [shape: bf16[128,256], index: 5, kind: input, shape index: {}]   ;;  %s1665_s6 = inlined_call_operand.vmem [shape: f32[1,256], index: 6, kind: input, shape index: {}]   ;;  %s1666_s7 = inlined_call_operand.hbm [shape: bf16[128,128], index: 7, kind: input, shape index: {}]   ;;  %s1667_s8 = inlined_call_operand.vmem [shape: f32[1,128], index: 8, kind: input, shape index: {}]   ;;  %s1668_s9 = inlined_call_operand.hbm [shape: bf16[128,128], index: 9, kind: input, shape index: {}]   ;;  %s1669_s10 = inlined_call_operand.vmem [shape: f32[1,128], index: 10, kind: input, shape index: {}]   ;;  %s1670_s11 = inlined_call_operand.hbm [shape: bf16[128,128], index: 11, kind: input, shape index: {}]   ;;  %s1671_s12 = inlined_call_operand.vmem [shape: f32[1,128], index: 12, kind: input, shape index: {}]   ;;  %s1672_s13 = inlined_call_operand.vmem [shape: bf16[16,128], index: 13, kind: input, shape index: {}]   ;;  %s1673_s14 = inlined_call_operand.hbm [shape: bf16[16,128], index: 14, kind: output, shape index: {0}]   ;;  %s1674_s15 = inlined_call_operand.hbm [shape: f32[16,256], index: 15, kind: output, shape index: {1}]  }
   0x1   :  { %22 = vsyncpa [#allocation6], 0 }
   0x2   :  { %23 = vsyncpa [#allocation9], 0 }
   0x3   :  { %24 = vsyncpa [#allocation12], 0 }
   0x4   :  { %25 = vsyncpa [#allocation4], 0 }
   0x5   :  { %26 = vsyncpa [#allocation16], 0  ;;  %s1442_s18 = smov [#allocation5]   ;;  %s1443_s20 = smov [#allocation8]  }
   0x6   :  { %s44_s19 = sshll.u32 %s1442_s18, 4  ;;  %s72_s21 = sshll.u32 %s1443_s20, 4  ;;  %s45_s19 = int_to_ptr.vmem [resolvable:$true] %s44_s19  ;;  %s73_s21 = int_to_ptr.vmem [resolvable:$true] %s72_s21 }
   0x7   :  { %s1258_s22 = scalar_lea.vmem %s45_s19, 1024  ;;  %p1263_p1 = scmp.lt.s32.totalorder %s45_s19, %s45_s19 }
   0x8   :  { %p1259_p0 = scmp.ne.s32.totalorder %s45_s19, %s1258_s22  ;;  %p1264_p2 = scmp.lt.s32.totalorder %s1258_s22, %s1258_s22 }
   0xa   :  { %p1265_p3 = por %p1264_p2, %p1263_p1 }
   0xc   :  { %p1266_p4 = pnand %p1265_p3, %p1259_p0 }
   0xe   :  { %1269 = shalt.err (!%p1266_p4)
}
   0xf   :  { %s1444_s23 = smov 64   ;;  %s1445_s24 = smov 4  }
  0x10   :  { %50 = dma.hbm_to_vmem [thread:$0]  %s1660_s1, 1024, %s45_s19, [#allocation6], %s1444_s23, %s1444_s23, %s1445_s24  }
  0x11   :  { %s1278_s27 = scalar_lea.vmem %s73_s21, 2048  ;;  %p1283_p6 = scmp.lt.s32.totalorder %s73_s21, %s73_s21 }
  0x12   :  { %p1279_p5 = scmp.ne.s32.totalorder %s73_s21, %s1278_s27  ;;  %p1284_p7 = scmp.lt.s32.totalorder %s1278_s27, %s1278_s27 }
  0x14   :  { %p1285_p8 = por %p1284_p7, %p1283_p6 }
  0x16   :  { %p1286_p9 = pnand %p1285_p8, %p1279_p5 }
  0x18   :  { %1289 = shalt.err (!%p1286_p9)
}
  0x19   :  { %s1446_s28 = smov 128   ;;  %s1447_s29 = smov 8  }
  0x1a   :  { %78 = dma.hbm_to_vmem [thread:$0]  %s1664_s5, 2048, %s73_s21, [#allocation9], %s1446_s28, %s1446_s28, %s1447_s29  }
  0x1b   :  { %s1448_s17 = smov [#allocation11]   ;;  %s1449_s20 = smov [#allocation2]  }
  0x1c   :  { %s100_s18 = sshll.u32 %s1448_s17, 4  ;;  %s32_s22 = sshll.u32 %s1449_s20, 4  ;;  %s101_s18 = int_to_ptr.vmem [resolvable:$true] %s100_s18  ;;  %s33_s22 = int_to_ptr.vmem [resolvable:$true] %s32_s22 }
  0x1d   :  { %s1298_s1 = scalar_lea.vmem %s101_s18, 1024  ;;  %p1303_p11 = scmp.lt.s32.totalorder %s101_s18, %s101_s18 }
  0x1e   :  { %p1299_p10 = scmp.ne.s32.totalorder %s101_s18, %s1298_s1  ;;  %p1304_p12 = scmp.lt.s32.totalorder %s1298_s1, %s1298_s1 }
  0x20   :  { %p1305_p13 = por %p1304_p12, %p1303_p11 }
  0x22   :  { %p1306_p0 = pnand %p1305_p13, %p1299_p10 }
  0x24   :  { %1309 = shalt.err (!%p1306_p0)
}
  0x25   :  { %106 = dma.hbm_to_vmem [thread:$0]  %s1668_s9, 1024, %s101_s18, [#allocation12], %s1444_s23, %s1444_s23, %s1445_s24  }
  0x26   :  { %s1318_s5 = scalar_lea.vmem %s33_s22, 128  ;;  %p1323_p2 = scmp.lt.s32.totalorder %s33_s22, %s33_s22 }
  0x27   :  { %p1319_p1 = scmp.ne.s32.totalorder %s33_s22, %s1318_s5  ;;  %p1324_p3 = scmp.lt.s32.totalorder %s1318_s5, %s1318_s5 }
  0x29   :  { %p1325_p4 = por %p1324_p3, %p1323_p2 }
  0x2b   :  { %p1326_p5 = pnand %p1325_p4, %p1319_p1 }
  0x2d   :  { %1329 = shalt.err (!%p1326_p5)
}
  0x2e   :  { %38 = dma.hbm_to_vmem [thread:$0]  %s1659_s0, 128, %s33_s22, [#allocation3], %s1444_s23, %s1444_s23, %s1445_s24  }
  0x2f   :  { %s1450_s27 = smov [#allocation7]   ;;  %s1451_s29 = smov [#allocation10]  }
  0x30   :  { %s58_s28 = sshll.u32 %s1450_s27, 4  ;;  %s86_s30 = sshll.u32 %s1451_s29, 4  ;;  %s59_s28 = int_to_ptr.vmem [resolvable:$true] %s58_s28  ;;  %s87_s30 = int_to_ptr.vmem [resolvable:$true] %s86_s30 }
  0x31   :  { %s1338_s9 = scalar_lea.vmem %s59_s28, 1024  ;;  %p1343_p7 = scmp.lt.s32.totalorder %s59_s28, %s59_s28 }
  0x32   :  { %p1339_p6 = scmp.ne.s32.totalorder %s59_s28, %s1338_s9  ;;  %p1344_p8 = scmp.lt.s32.totalorder %s1338_s9, %s1338_s9 }
  0x34   :  { %p1345_p9 = por %p1344_p8, %p1343_p7 }
  0x36   :  { %p1346_p10 = pnand %p1345_p9, %p1339_p6 }
  0x38   :  { %1349 = shalt.err (!%p1346_p10)
}
  0x39   :  { %64 = dma.hbm_to_vmem [thread:$0]  %s1662_s3, 1024, %s59_s28, [#allocation6], %s1444_s23, %s1444_s23, %s1445_s24  }
  0x3a   :  { %s1358_s0 = scalar_lea.vmem %s87_s30, 1024  ;;  %p1363_p12 = scmp.lt.s32.totalorder %s87_s30, %s87_s30 }
  0x3b   :  { %p1359_p11 = scmp.ne.s32.totalorder %s87_s30, %s1358_s0  ;;  %p1364_p13 = scmp.lt.s32.totalorder %s1358_s0, %s1358_s0 }
  0x3d   :  { %p1365_p0 = por %p1364_p13, %p1363_p12 }
  0x3f   :  { %p1366_p1 = pnand %p1365_p0, %p1359_p11 }
  0x41   :  { %1369 = shalt.err (!%p1366_p1)
}
  0x42   :  { %92 = dma.hbm_to_vmem [thread:$0]  %s1666_s7, 1024, %s87_s30, [#allocation9], %s1444_s23, %s1444_s23, %s1445_s24  }
  0x43   :  { %s1452_s22 = smov [#allocation13]  }
  0x44   :  { %s114_s1 = sshll.u32 %s1452_s22, 4  ;;  %s115_s1 = int_to_ptr.vmem [resolvable:$true] %s114_s1 }
  0x45   :  { %s1378_s19 = scalar_lea.vmem %s115_s1, 1024  ;;  %p1383_p3 = scmp.lt.s32.totalorder %s115_s1, %s115_s1 }
  0x46   :  { %p1379_p2 = scmp.ne.s32.totalorder %s115_s1, %s1378_s19  ;;  %p1384_p4 = scmp.lt.s32.totalorder %s1378_s19, %s1378_s19 }
  0x48   :  { %p1385_p5 = por %p1384_p4, %p1383_p3 }
  0x4a   :  { %p1386_p6 = pnand %p1385_p5, %p1379_p2 }
  0x4c   :  { %1389 = shalt.err (!%p1386_p6)
}
  0x4d   :  { %120 = dma.hbm_to_vmem [thread:$0]  %s1670_s11, 1024, %s115_s1, [#allocation12], %s1444_s23, %s1444_s23, %s1445_s24  }
  0x4e   :  { %1430 = dma.done.wait [#allocation3], 128  }
  0x4f   :  { %1431 = vsyncadd [#allocation3], 4294967168 }
  0x50   :  { %1432 = dma.done.wait [#allocation6], 2048  }
  0x51   :  { %1433 = vsyncadd [#allocation6], 4294965248 }
  0x52   :  { %1434 = dma.done.wait [#allocation9], 3072  }
  0x53   :  { %1435 = vsyncadd [#allocation9], 4294964224 }
  0x54   :  { %1436 = dma.done.wait [#allocation12], 2048  }
  0x55   :  { %1437 = vsyncadd [#allocation12], 4294965248  ;;  %v1453_v0 = vmov 0.0   ;;  %vm1454_vm0 = vmmov 0   ;;  %v1181_v1 = vld [vmem:[#allocation5 + $0x38] sm:$0xff]   ;;  %v1182_v2 = vld [vmem:[#allocation5 + $0x30] sm:$0xff]  }
  0x56   :  { %1063 = vmatprep.subr.bf16.mxu0 %v1453_v0  ;;  %1079 = vmatprep.mubr.msk.bf16.mxu0 %vm1454_vm0, %v1453_v0  ;;  %v1183_v3 = vld [vmem:[#allocation5 + $0x28] sm:$0xff]   ;;  %v1190_v4 = vld [vmem:[#allocation7 + $0x38] sm:$0xff]   ;;  %v1184_v5 = vld [vmem:[#allocation5 + $0x20] sm:$0xff]   ;;  %v1455_v44 = vmov 0   ;;  %s1456_s29 = smov [#allocation15]  }
  0x57   :  { %1083 = vmatprep.subr.bf16.mxu1 %v1453_v0  ;;  %1099 = vmatprep.mubr.msk.bf16.mxu1 %vm1454_vm0, %v1453_v0  ;;  %v1191_v6 = vld [vmem:[#allocation7 + $0x30] sm:$0xff]   ;;  %v1185_v7 = vld [vmem:[#allocation5 + $0x18] sm:$0xff]   ;;  %v1192_v8 = vld [vmem:[#allocation7 + $0x28] sm:$0xff]   ;;  %s924_s30 = sshll.u32 %s1456_s29, 4  ;;  %s925_s30 = int_to_ptr.vmem [resolvable:$true] %s924_s30 }
  0x58   :  { %1064 = vmatpush3.bf16.msra.mxu0 %v1181_v1  ;;  %1084 = vmatpush3.bf16.msra.mxu1 %v1190_v4  ;;  %v1186_v9 = vld [vmem:[#allocation5 + $0x10] sm:$0xff]   ;;  %v1193_v10 = vld [vmem:[#allocation7 + $0x20] sm:$0xff]   ;;  %v1187_v11 = vld [vmem:[#allocation5 + $0x8] sm:$0xff]   ;;  %s1390_s9 = scalar_lea.vmem %s925_s30, 512  ;;  %p1395_p8 = scmp.lt.s32.totalorder %s925_s30, %s925_s30 }
  0x59   :  { %1065 = vmatprep.subr.bf16.mxu0 %v1453_v0  ;;  %1085 = vmatprep.subr.bf16.mxu1 %v1453_v0  ;;  %v1194_v12 = vld [vmem:[#allocation7 + $0x18] sm:$0xff]   ;;  %v1188_v13 = vld [vmem:[#allocation5] sm:$0xff]   ;;  %v1195_v15 = vld [vmem:[#allocation7 + $0x10] sm:$0xff]   ;;  %p1391_p7 = scmp.ne.s32.totalorder %s925_s30, %s1390_s9  ;;  %p1396_p9 = scmp.lt.s32.totalorder %s1390_s9, %s1390_s9 }
  0x5a   :  { %v1189_v14 = vld [vmem:[#allocation2] sm:$0xff]   ;;  %v1196_v16 = vld [vmem:[#allocation7 + $0x8] sm:$0xff]   ;;  %v1197_v17 = vld [vmem:[#allocation7] sm:$0xff]  }
  0x5b   :  { %v1198_v18 = vld [vmem:[#allocation8 + $0x70] ss:$8 sps:$4 sm:$0xff]   ;;  %v1200_v19 = vld [vmem:[#allocation8 + $0x74] ss:$8 sps:$4 sm:$0xff]   ;;  %v1203_v20 = vld [vmem:[#allocation8 + $0x64] ss:$8 sps:$4 sm:$0xff]   ;;  %p1397_p10 = por %p1396_p9, %p1395_p8 }
  0x5c   :  { %1066 = vmatpush3.bf16.msra.mxu0 %v1182_v2  ;;  %1086 = vmatpush3.bf16.msra.mxu1 %v1191_v6  ;;  %v1201_v21 = vld [vmem:[#allocation8 + $0x60] ss:$8 sps:$4 sm:$0xff]   ;;  %v1206_v22 = vld [vmem:[#allocation8 + $0x54] ss:$8 sps:$4 sm:$0xff]   ;;  %v1204_v23 = vld [vmem:[#allocation8 + $0x50] ss:$8 sps:$4 sm:$0xff]  }
  0x5d   :  { %1067 = vmatprep.subr.bf16.mxu0 %v1453_v0  ;;  %1087 = vmatprep.subr.bf16.mxu1 %v1453_v0  ;;  %v1209_v24 = vld [vmem:[#allocation8 + $0x44] ss:$8 sps:$4 sm:$0xff]   ;;  %v1207_v25 = vld [vmem:[#allocation8 + $0x40] ss:$8 sps:$4 sm:$0xff]   ;;  %v1212_v26 = vld [vmem:[#allocation8 + $0x34] ss:$8 sps:$4 sm:$0xff]   ;;  %p1398_p11 = pnand %p1397_p10, %p1391_p7 }
  0x5e   :  { %v1210_v27 = vld [vmem:[#allocation8 + $0x30] ss:$8 sps:$4 sm:$0xff]   ;;  %v1215_v28 = vld [vmem:[#allocation8 + $0x24] ss:$8 sps:$4 sm:$0xff]   ;;  %v1213_v29 = vld [vmem:[#allocation8 + $0x20] ss:$8 sps:$4 sm:$0xff]  }
  0x5f   :  { %v943_v30 = vld [vmem:[%s1661_s2] ss:$0 sm:$0xff]  ;;  %v1218_v40 = vld [vmem:[#allocation8 + $0x14] ss:$8 sps:$4 sm:$0xff]   ;;  %v1221_v42 = vld [vmem:[#allocation8 + $0x4] ss:$8 sps:$4 sm:$0xff]  }
  0x60   :  { %1068 = vmatpush3.bf16.msra.mxu0 %v1183_v3  ;;  %1088 = vmatpush3.bf16.msra.mxu1 %v1192_v8  ;;  %v1216_v41 = vld [vmem:[#allocation8 + $0x10] ss:$8 sps:$4 sm:$0xff]   ;;  %v1219_v43 = vld [vmem:[#allocation8] ss:$8 sps:$4 sm:$0xff]  }
  0x61   :  { %1069 = vmatprep.subr.bf16.mxu0 %v1453_v0  ;;  %1089 = vmatprep.subr.bf16.mxu1 %v1453_v0  ;;  %v953_v45 = vld [vmem:[%s1663_s4] ss:$0 sm:$0xff]  ;;  %v1223_v56 = vld [vmem:[#allocation10 + $0x30] sm:$0xff]   ;;  %v1224_v57 = vld [vmem:[#allocation10 + $0x28] sm:$0xff]  }
  0x62   :  { %v1222_v55 = vld [vmem:[#allocation10 + $0x38] sm:$0xff]   ;;  %v1225_v58 = vld [vmem:[#allocation10 + $0x20] sm:$0xff]   ;;  %v1227_v60 = vld [vmem:[#allocation10 + $0x10] sm:$0xff]  }
  0x63   :  { %v1226_v59 = vld [vmem:[#allocation10 + $0x18] sm:$0xff]   ;;  %v1228_v61 = vld [vmem:[#allocation10 + $0x8] sm:$0xff]   ;;  %v1229_v62 = vld [vmem:[#allocation10] sm:$0xff]  }
  0x64   :  { %1070 = vmatpush3.bf16.msra.mxu0 %v1184_v5  ;;  %1090 = vmatpush3.bf16.msra.mxu1 %v1193_v10  ;;  %v1230_v63 = vld [vmem:[#allocation11 + $0x38] sm:$0xff]   ;;  %v1231_v1 = vld [vmem:[#allocation11 + $0x30] sm:$0xff]   ;;  %v1232_v2 = vld [vmem:[#allocation11 + $0x28] sm:$0xff]   ;;  %v403_v5 = vlaneseq }
  0x65   :  { %1071 = vmatprep.subr.bf16.mxu0 %v1453_v0  ;;  %1091 = vmatprep.subr.bf16.mxu1 %v1453_v0  ;;  %v1233_v3 = vld [vmem:[#allocation11 + $0x20] sm:$0xff]   ;;  %v1234_v4 = vld [vmem:[#allocation11 + $0x18] sm:$0xff]  }
  0x66   :  { %v404_v6 = vshrl.u32 %v403_v5, 7  ;;  %v401_v8 = vld [vmem:[%s1665_s6] sm:$0x3] }
  0x68   :  { %1072 = vmatpush3.bf16.msra.mxu0 %v1185_v7  ;;  %1092 = vmatpush3.bf16.msra.mxu1 %v1194_v12  ;;  %v405_v7 = vsub.s32 0, %v404_v6 }
  0x69   :  { %1073 = vmatprep.subr.bf16.mxu0 %v1453_v0  ;;  %1093 = vmatprep.subr.bf16.mxu1 %v1453_v0 }
  0x6a   :  { %v406_v10 = vrot.slane %v401_v8, %v405_v7 }
  0x6c   :  { %1074 = vmatpush3.bf16.msra.mxu0 %v1186_v9  ;;  %1094 = vmatpush3.bf16.msra.mxu1 %v1195_v15  ;;  %v409_v9 = vsub.s32 1, %v404_v6 }
  0x6d   :  { %1075 = vmatprep.subr.bf16.mxu0 %v1453_v0  ;;  %1095 = vmatprep.subr.bf16.mxu1 %v1453_v0 }
  0x70   :  { %1076 = vmatpush3.bf16.msra.mxu0 %v1187_v11  ;;  %1096 = vmatpush3.bf16.msra.mxu1 %v1196_v16  ;;  %v410_v11 = vrot.slane %v401_v8, %v409_v9 }
  0x71   :  { %1077 = vmatprep.subr.bf16.mxu0 %v1453_v0  ;;  %1097 = vmatprep.subr.bf16.mxu1 %v1453_v0 }
  0x74   :  { %1078 = vmatpush3.bf16.msra.mxu0 %v1188_v13  ;;  %1098 = vmatpush3.bf16.msra.mxu1 %v1197_v17 }
  0x75   :  { %1103 = vmatprep.subr.bf16.mxu1 %v1453_v0  ;;  %493 = vmatprep.subr.bf16.mxu0 %v1200_v19 }
  0x77   :  { %1080 = vmatmul.mubr.bf16.vlgmr.msra.gmra.mxu0 %v1189_v14 }
  0x78   :  { %494 = vmatpush1.bf16.msra.mxu0 %v1198_v18  ;;  %525 = vmatprep.mubr.bf16.mxu0 %v1455_v44 }
  0x79   :  { %495 = vmatprep.subr.bf16.mxu0 %v1203_v20 }
  0x7c   :  { %496 = vmatpush1.bf16.msra.mxu0 %v1201_v21 }
  0x7d   :  { %497 = vmatprep.subr.bf16.mxu0 %v1206_v22 }
  0x80   :  { %498 = vmatpush1.bf16.msra.mxu0 %v1204_v23 }
  0x81   :  { %499 = vmatprep.subr.bf16.mxu0 %v1209_v24  ;;  %v1010_v24 = vld [vmem:[%s1672_s13] sm:$0xff]  }
  0x84   :  { %500 = vmatpush1.bf16.msra.mxu0 %v1207_v25  ;;  %v1011_v25 = vunpack.c.l.bf16 %v1010_v24 }
  0x85   :  { %501 = vmatprep.subr.bf16.mxu0 %v1212_v26 }
  0x88   :  { %502 = vmatpush1.bf16.msra.mxu0 %v1210_v27  ;;  %v1012_v27 = vunpack.c.h.bf16 %v1010_v24 }
  0x89   :  { %503 = vmatprep.subr.bf16.mxu0 %v1215_v28 }
  0x8c   :  { %504 = vmatpush1.bf16.msra.mxu0 %v1213_v29 }
  0x8d   :  { %505 = vmatprep.subr.bf16.mxu0 %v1218_v40  ;;  %v1241_v40 = vld [vmem:[#allocation13 + $0x20] sm:$0xff]  }
  0x90   :  { %506 = vmatpush1.bf16.msra.mxu0 %v1216_v41  ;;  %v1242_v41 = vld [vmem:[#allocation13 + $0x18] sm:$0xff]  }
  0x91   :  { %507 = vmatprep.subr.bf16.mxu0 %v1221_v42  ;;  %v978_v42 = vld [vmem:[%s1667_s8] ss:$0 sm:$0xff] }
  0x94   :  { %508 = vmatpush1.bf16.msra.mxu0 %v1219_v43 }
  0x95   :  { %1123 = vmatprep.subr.bf16.mxu0 %v1453_v0 }
 0x137   :  { %v260_v31 = vpop.f32.mrf.mxu0 }
 0x138   :  { %v261_v33 = vadd.f32 %v943_v30, %v260_v31 }
 0x139   :  { %v1081_v32 = vpop.f32.mrf.mxu0 }
 0x13a   :  { %v267_v37 = vmax.f32 %v261_v33, 0.0 }
 0x13b   :  { %v263_v34 = vpop.f32.mrf.mxu0 }
 0x13c   :  { %v264_v35 = vadd.f32 %v943_v30, %v263_v34  ;;  %v1235_v34 = vld [vmem:[#allocation11 + $0x10] sm:$0xff]  }
 0x13d   :  { %v1082_v36 = vpop.f32.mrf.mxu0 }
 0x13e   :  { %v268_v38 = vmax.f32 %v264_v35, 0.0  ;;  %v1236_v35 = vld [vmem:[#allocation11 + $0x8] sm:$0xff]   ;;  %v1237_v36 = vld [vmem:[#allocation11] sm:$0xff]  }
 0x140   :  { %v269_v39 = vpack.c.bf16 %v268_v38, %v267_v37  ;;  %v1238_v37 = vld [vmem:[#allocation13 + $0x38] sm:$0xff]   ;;  %v1239_v38 = vld [vmem:[#allocation13 + $0x30] sm:$0xff]  }
 0x142   :  { %1100 = vmatmul.mubr.bf16.vlgmr.msra.gmra.mxu1 %v269_v39  ;;  %v1240_v39 = vld [vmem:[#allocation13 + $0x28] sm:$0xff]  }
 0x143   :  { %1119 = vmatprep.mubr.msk.bf16.mxu1 %vm1454_vm0, %v1453_v0  ;;  %1104 = vmatpush3.bf16.msra.mxu1 %v1222_v55  ;;  %v987_v55 = vld [vmem:[%s1669_s10] ss:$0 sm:$0xff] }
 0x144   :  { %1105 = vmatprep.subr.bf16.mxu1 %v1453_v0 }
 0x147   :  { %1106 = vmatpush3.bf16.msra.mxu1 %v1223_v56 }
 0x148   :  { %1107 = vmatprep.subr.bf16.mxu1 %v1453_v0 }
 0x14b   :  { %1108 = vmatpush3.bf16.msra.mxu1 %v1224_v57 }
 0x14c   :  { %1109 = vmatprep.subr.bf16.mxu1 %v1453_v0 }
 0x14f   :  { %1110 = vmatpush3.bf16.msra.mxu1 %v1225_v58 }
 0x150   :  { %1111 = vmatprep.subr.bf16.mxu1 %v1453_v0 }
 0x153   :  { %1112 = vmatpush3.bf16.msra.mxu1 %v1226_v59 }
 0x154   :  { %1113 = vmatprep.subr.bf16.mxu1 %v1453_v0 }
 0x157   :  { %1114 = vmatpush3.bf16.msra.mxu1 %v1227_v60 }
 0x158   :  { %1115 = vmatprep.subr.bf16.mxu1 %v1453_v0 }
 0x15b   :  { %1116 = vmatpush3.bf16.msra.mxu1 %v1228_v61 }
 0x15c   :  { %1117 = vmatprep.subr.bf16.mxu1 %v1453_v0 }
 0x15f   :  { %1118 = vmatpush3.bf16.msra.mxu1 %v1229_v62 }
 0x160   :  { %1143 = vmatprep.subr.bf16.mxu1 %v1453_v0 }
 0x202   :  { %v375_v46 = vpop.f32.mrf.mxu1 }
 0x203   :  { %v376_v48 = vadd.f32 %v953_v45, %v375_v46 }
 0x204   :  { %v1101_v47 = vpop.f32.mrf.mxu1 }
 0x205   :  { %v382_v52 = vmax.f32 %v376_v48, 0.0 }
 0x206   :  { %v378_v49 = vpop.f32.mrf.mxu1 }
 0x207   :  { %v379_v50 = vadd.f32 %v953_v45, %v378_v49 }
 0x208   :  { %v1102_v51 = vpop.f32.mrf.mxu1 }
 0x209   :  { %v383_v53 = vmax.f32 %v379_v50, 0.0 }
 0x20b   :  { %v384_v54 = vpack.c.bf16 %v383_v53, %v382_v52  ;;  %v1243_v52 = vld [vmem:[#allocation13 + $0x10] sm:$0xff]   ;;  %v1244_v53 = vld [vmem:[#allocation13 + $0x8] sm:$0xff]  }
 0x20d   :  { %526 = vmatmul.mubr.bf16.vlgmr.msra.gmra.mxu0 %v384_v54  ;;  %v1245_v54 = vld [vmem:[#allocation13] sm:$0xff]  }
 0x20e   :  { %1139 = vmatprep.mubr.msk.bf16.mxu0 %vm1454_vm0, %v1453_v0  ;;  %1124 = vmatpush3.bf16.msra.mxu0 %v1230_v63 }
 0x20f   :  { %1125 = vmatprep.subr.bf16.mxu0 %v1453_v0 }
 0x212   :  { %1126 = vmatpush3.bf16.msra.mxu0 %v1231_v1 }
 0x213   :  { %1127 = vmatprep.subr.bf16.mxu0 %v1453_v0 }
 0x216   :  { %1128 = vmatpush3.bf16.msra.mxu0 %v1232_v2 }
 0x217   :  { %1129 = vmatprep.subr.bf16.mxu0 %v1453_v0 }
 0x21a   :  { %1130 = vmatpush3.bf16.msra.mxu0 %v1233_v3 }
 0x21b   :  { %1131 = vmatprep.subr.bf16.mxu0 %v1453_v0 }
 0x21e   :  { %1132 = vmatpush3.bf16.msra.mxu0 %v1234_v4 }
 0x21f   :  { %1133 = vmatprep.subr.bf16.mxu0 %v1453_v0 }
 0x222   :  { %1134 = vmatpush3.bf16.msra.mxu0 %v1235_v34 }
 0x223   :  { %1135 = vmatprep.subr.bf16.mxu0 %v1453_v0 }
 0x226   :  { %1136 = vmatpush3.bf16.msra.mxu0 %v1236_v35 }
 0x227   :  { %1137 = vmatprep.subr.bf16.mxu0 %v1453_v0 }
 0x22a   :  { %1138 = vmatpush3.bf16.msra.mxu0 %v1237_v36 }
 0x2cd   :  { %v527_v12 = vpop.f32.mrf.mxu0 }
 0x2ce   :  { %v528_v13 = vadd.f32 %v527_v12, %v406_v10 }
 0x2cf   :  { %v529_v14 = vpop.f32.mrf.mxu0 }
 0x2d0   :  { %903 = vst [vmem:[#allocation15] sm:$0xff] %v528_v13  ;;  %v530_v15 = vadd.f32 %v529_v14, %v410_v11 }
 0x2d1   :  { %v531_v16 = vpop.f32.mrf.mxu0 }
 0x2d2   :  { %v540_v17 = vmul.f32 0.5, %v530_v15  ;;  %905 = vst [vmem:[#allocation15 + $0x8] sm:$0xff] %v530_v15  ;;  %v532_v18 = vadd.f32 %v531_v16, %v406_v10 }
 0x2d3   :  { %v533_v19 = vpop.f32.mrf.mxu0 }
 0x2d4   :  { %v542_v20 = vmul.f32 1.442695, %v540_v17  ;;  %904 = vst [vmem:[#allocation15 + $0x10] sm:$0xff] %v532_v18  ;;  %v534_v21 = vadd.f32 %v533_v19, %v410_v11 }
 0x2d6   :  { %1246 = vpow2.f32 %v542_v20  ;;  %v541_v22 = vmul.f32 0.5, %v534_v21  ;;  %906 = vst [vmem:[#allocation15 + $0x18] sm:$0xff] %v534_v21 }
 0x2d8   :  { %v544_v23 = vmul.f32 1.442695, %v541_v22 }
 0x2da   :  { %1248 = vpow2.f32 %v544_v23 }
 0x2e3   :  { %v1247_v26 = vpop.eup %1246 }
 0x2e4   :  { %v546_v28 = vmul.f32 %v1247_v26, %v1011_v25 }
 0x2e6   :  { %v548_v31 = vadd.f32 %v546_v28, %v528_v13 }
 0x2e7   :  { %v1249_v29 = vpop.eup %1248 }
 0x2e8   :  { %v547_v30 = vmul.f32 %v1249_v29, %v1012_v27 }
 0x2ea   :  { %v549_v32 = vadd.f32 %v547_v30, %v532_v18 }
 0x2ec   :  { %v550_v33 = vpack.c.bf16 %v549_v32, %v548_v31 }
 0x2ee   :  { %1120 = vmatmul.mubr.bf16.vlgmr.msra.gmra.mxu1 %v550_v33 }
 0x2ef   :  { %1159 = vmatprep.mubr.msk.bf16.mxu1 %vm1454_vm0, %v1453_v0  ;;  %1144 = vmatpush3.bf16.msra.mxu1 %v1238_v37 }
 0x2f0   :  { %1145 = vmatprep.subr.bf16.mxu1 %v1453_v0 }
 0x2f3   :  { %1146 = vmatpush3.bf16.msra.mxu1 %v1239_v38 }
 0x2f4   :  { %1147 = vmatprep.subr.bf16.mxu1 %v1453_v0 }
 0x2f7   :  { %1148 = vmatpush3.bf16.msra.mxu1 %v1240_v39 }
 0x2f8   :  { %1149 = vmatprep.subr.bf16.mxu1 %v1453_v0 }
 0x2fb   :  { %1150 = vmatpush3.bf16.msra.mxu1 %v1241_v40 }
 0x2fc   :  { %1151 = vmatprep.subr.bf16.mxu1 %v1453_v0 }
 0x2ff   :  { %1152 = vmatpush3.bf16.msra.mxu1 %v1242_v41 }
 0x300   :  { %1153 = vmatprep.subr.bf16.mxu1 %v1453_v0 }
 0x303   :  { %1154 = vmatpush3.bf16.msra.mxu1 %v1243_v52 }
 0x304   :  { %1155 = vmatprep.subr.bf16.mxu1 %v1453_v0 }
 0x307   :  { %1156 = vmatpush3.bf16.msra.mxu1 %v1244_v53 }
 0x308   :  { %1157 = vmatprep.subr.bf16.mxu1 %v1453_v0 }
 0x30b   :  { %1158 = vmatpush3.bf16.msra.mxu1 %v1245_v54 }
 0x3ae   :  { %v656_v43 = vpop.f32.mrf.mxu1 }
 0x3af   :  { %v657_v45 = vadd.f32 %v978_v42, %v656_v43 }
 0x3b0   :  { %v1121_v44 = vpop.f32.mrf.mxu1 }
 0x3b1   :  { %v663_v49 = vmax.f32 %v657_v45, 0.0 }
 0x3b2   :  { %v659_v46 = vpop.f32.mrf.mxu1 }
 0x3b3   :  { %v660_v47 = vadd.f32 %v978_v42, %v659_v46 }
 0x3b4   :  { %v1122_v48 = vpop.f32.mrf.mxu1 }
 0x3b5   :  { %v664_v50 = vmax.f32 %v660_v47, 0.0 }
 0x3b7   :  { %v665_v51 = vpack.c.bf16 %v664_v50, %v663_v49 }
 0x3b9   :  { %1140 = vmatmul.mubr.bf16.vlgmr.msra.gmra.mxu0 %v665_v51 }
 0x479   :  { %v771_v56 = vpop.f32.mrf.mxu0 }
 0x47a   :  { %v772_v58 = vadd.f32 %v987_v55, %v771_v56 }
 0x47b   :  { %v1141_v57 = vpop.f32.mrf.mxu0 }
 0x47c   :  { %v778_v62 = vmax.f32 %v772_v58, 0.0 }
 0x47d   :  { %v774_v59 = vpop.f32.mrf.mxu0 }
 0x47e   :  { %v775_v60 = vadd.f32 %v987_v55, %v774_v59 }
 0x47f   :  { %v1142_v61 = vpop.f32.mrf.mxu0 }
 0x480   :  { %v779_v63 = vmax.f32 %v775_v60, 0.0 }
 0x482   :  { %v780_v1 = vpack.c.bf16 %v779_v63, %v778_v62 }
 0x484   :  { %1160 = vmatmul.mubr.bf16.vlgmr.msra.gmra.mxu1 %v780_v1 }
 0x485   :  { %1401 = shalt.err (!%p1398_p11)
}
 0x486   :  { %s1457_s10 = smov 256   ;;  %s1458_s16 = smov 16   ;;  %v996_v2 = vld [vmem:[%s1671_s12] ss:$0 sm:$0xff] }
 0x487   :  { %930 = dma.vmem_to_hbm [thread:$0]  %s925_s30, 512, %s1674_s15, [#allocation16], %s1457_s10, %s1457_s10, %s1458_s16  }
 0x488   :  { %s1459_s22 = smov [#allocation14]  }
 0x489   :  { %s912_s1 = sshll.u32 %s1459_s22, 4  ;;  %s913_s1 = int_to_ptr.vmem [resolvable:$true] %s912_s1 }
 0x48a   :  { %s1410_s19 = scalar_lea.vmem %s913_s1, 128  ;;  %p1415_p13 = scmp.lt.s32.totalorder %s913_s1, %s913_s1 }
 0x48b   :  { %p1411_p12 = scmp.ne.s32.totalorder %s913_s1, %s1410_s19  ;;  %p1416_p0 = scmp.lt.s32.totalorder %s1410_s19, %s1410_s19 }
 0x48d   :  { %p1417_p1 = por %p1416_p0, %p1415_p13 }
 0x48f   :  { %p1418_p2 = pnand %p1417_p1, %p1411_p12 }
 0x544   :  { %v886_v0 = vpop.f32.mrf.mxu1 }
 0x545   :  { %v887_v5 = vadd.f32 %v996_v2, %v886_v0 }
 0x546   :  { %v1161_v3 = vpop.f32.mrf.mxu1 }
 0x548   :  { %v889_v4 = vpop.f32.mrf.mxu1 }
 0x549   :  { %v890_v6 = vadd.f32 %v996_v2, %v889_v4 }
 0x54a   :  { %v1162_v7 = vpop.f32.mrf.mxu1 }
 0x54b   :  { %v1016_v8 = vpack.c.bf16 %v890_v6, %v887_v5 }
 0x54d   :  { %1017 = vst [vmem:[#allocation14] sm:$0xff] %v1016_v8  }
 0x54e   :  { %1421 = shalt.err (!%p1418_p2)
}
 0x54f   :  { %918 = dma.vmem_to_hbm [thread:$0]  %s913_s1, 128, %s1673_s14, [#allocation4], %s1444_s23, %s1444_s23, %s1445_s24  }
 0x550   :  { %1438 = dma.done.wait [#allocation4], 128  }
 0x551   :  { %1439 = vsyncadd [#allocation4], 4294967168 }
 0x552   :  { %1440 = dma.done.wait [#allocation16], 512  }
 0x553   :  { %1441 = vsyncadd [#allocation16], 4294966784 }
 0x554   :  { %937 = vsyncpa [#allocation3], 1 }
 0x555   :  { %938 = vsyncpa [#allocation6], 1 }
 0x556   :  { %939 = vsyncpa [#allocation9], 1 }
 0x557   :  { %940 = vsyncpa [#allocation12], 1 }
 0x558   :  { %941 = vsyncpa [#allocation4], 1 }
 0x559   :  { %942 = vsyncpa [#allocation16], 1 }

</bundles_post_ra>
